<compile_context>
chip_gen: v6e
topology: v6e:2x2x1
jax: 0.10.0
libtpu: 0.0.40
codegen_flags: <defaults>
</compile_context>

<pallas_src>
import math
from functools import partial

import numpy as np

import jax
import jax.numpy as jnp
from jax import lax
from jax.experimental import pallas as pl
from jax.experimental.pallas import tpu as pltpu


# ------------------------------- kernel ------------------------------------
def schnet_kernel(ln2,
                  x0_ref, src_ref, dst_ref, gC_ref,
                  wnn_ref, win_ref, bin_ref, wout_ref, bout_ref,
                  wlin_ref, blin_ref,
                  out_ref, xf_scr, agg_scr):
    """Grid = (L interactions, edge chunks); out_ref holds the residual state x."""
    Np, Hp = out_ref.shape
    Ec = gC_ref.shape[0]
    l = pl.program_id(0)
    e = pl.program_id(1)
    last_e = pl.num_programs(1) - 1

    # Cold start: pre-embedded x0 (computed in the wrapper) seeds the accumulator.
    @pl.when((l == 0) & (e == 0))
    def _():
        out_ref[...] = x0_ref[...]

    # Once per interaction (first edge chunk): node-side input linear + zero agg.
    @pl.when(e == 0)
    def _():
        xf_scr[...] = (jnp.dot(out_ref[...], win_ref[...],
                               preferred_element_type=jnp.float32)
                       + bin_ref[...])                                   # [Np, Fp]
        agg_scr[...] = jnp.zeros(agg_scr.shape, agg_scr.dtype)

    # ---- per-edge-chunk work ----
    # Filter W = C * (gauss @ wnn + bnn); cutoff + bias are folded into the
    # hoisted gC = [C*gauss, C] tensor and the augmented [wnn; bnn] weight.
    W = jnp.dot(gC_ref[...], wnn_ref[...],
                preferred_element_type=jnp.float32)                      # [Ec, Fp]

    # Gather / scatter one-hots for this chunk (exact in bf16, built on the VPU).
    # The scatter one-hot is built already transposed ([Np, Ec]) so the
    # aggregation below is a canonical (M,K)x(K,N) MXU matmul (no XLU relayout).
    gat = (lax.broadcasted_iota(jnp.int32, (Ec, Np), 1)
           == src_ref[...]).astype(jnp.bfloat16)                         # [Ec, Np]
    sct = (lax.broadcasted_iota(jnp.int32, (Np, Ec), 0)
           == dst_ref[...]).astype(jnp.bfloat16)                         # [Np, Ec]

    # x_j = xf[src]; messages m = x_j * W; agg[n] += sum_{dst==n} m.
    # bf16 on the MXU, f32 accumulation; padded edges have W == 0 -> no-ops.
    xj = jnp.dot(gat, xf_scr[...].astype(jnp.bfloat16),
                 preferred_element_type=jnp.float32)                     # [Ec, Fp]
    msg = (xj * W).astype(jnp.bfloat16)                                  # [Ec, Fp]
    agg_scr[...] += jnp.dot(sct, msg,
                            preferred_element_type=jnp.float32)          # [Np, Fp]

    # ---- layer finalize at the last edge chunk ----
    @pl.when(e == last_e)
    def _():
        xo = (jnp.dot(agg_scr[...], wout_ref[...],
                      preferred_element_type=jnp.float32) + bout_ref[...])
        # ShiftedSoftplus (stable); softplus(0) - log 2 == 0 so padded lanes stay 0.
        xo = jnp.maximum(xo, 0.0) + jnp.log1p(jnp.exp(-jnp.abs(xo))) - ln2
        xo = (jnp.dot(xo, wlin_ref[...],
                      preferred_element_type=jnp.float32) + blin_ref[...])
        out_ref[...] = out_ref[...] + xo                                 # residual


# ---------------------------- padding helpers --------------------------------
def _rup(n, m):
    return ((n + m - 1) // m) * m


def _pad2(x, r, c):
    return jnp.pad(x, ((0, r - x.shape[0]), (0, c - x.shape[1])))


def _pad3(x, r, c):
    return jnp.pad(x, ((0, 0), (0, r - x.shape[1]), (0, c - x.shape[2])))


def _vmem_ceiling():
    """Per-generation VMEM cap: ~100 MiB on 128-MiB v5e/v6e, ~48 MiB on 64-MiB v7x."""
    cap = 64 << 20
    try:
        cap = int(getattr(pltpu.get_tpu_info(), "vmem_capacity_bytes", cap))
    except Exception:
        pass
    return min(100 << 20, max(cap - (16 << 20), cap // 2))


# ------------------------------ wrapper -------------------------------------
def schnet_forward(atomic_numbers, edge_index, edge_attr, params, cutoff,
                   edge_chunk=None):
    emb = params["emb"]                          # [V, H]
    off = params["offsets"]                      # [1, G]
    wnn, bnn = params["wnn"], params["bnn"]      # [L, G, F], [L, 1, F]
    win, bin_ = params["win"], params["bin"]     # [L, H, F], [L, 1, F]
    wout, bout = params["wout"], params["bout"]  # [L, F, H], [L, 1, H]
    wlin, blin = params["wlin"], params["blin"]  # [L, H, H], [L, 1, H]

    L, G, F = wnn.shape
    H = emb.shape[1]
    N = atomic_numbers.shape[0]
    E = edge_attr.shape[0]

    # Lane dims (incl. N, E) -> multiples of 128: unmasked stores and full
    # 128-wide MXU contraction on the one-hot gather/scatter.
    Hp, Fp = _rup(H, 128), _rup(F, 128)
    Gp = _rup(G + 1, 128)                        # +1 column carries the cutoff C
    Np = _rup(N, 128)
    if edge_chunk is None:
        edge_chunk = 512                         # >=256 keeps v6e/v7x MXU M-dim full
    Ec = min(_rup(E, 128), _rup(edge_chunk, 128))
    Ep = _rup(E, Ec)
    n_chunks = Ep // Ec

    # ---- layer-invariant precompute, done once by XLA in the wrapper ----
    x0 = emb[atomic_numbers.astype(jnp.int32)]                      # [N, H]
    x0 = _pad2(x0.astype(jnp.float32), Np, Hp)                      # [Np, Hp]

    dist = edge_attr.reshape(E, 1).astype(jnp.float32)
    delta = cutoff / (G - 1)                     # linspace(0, cutoff, G) spacing
    coeff = -0.5 / (delta * delta)
    gauss = jnp.exp(coeff * (dist - off) ** 2)                      # [E, G]
    C = 0.5 * (jnp.cos(dist * (math.pi / cutoff)) + 1.0)            # [E, 1]
    # gC = [C*gauss, C]; padded edge rows are all-zero -> W == 0 -> no-op edges.
    gC = _pad2(jnp.concatenate([C * gauss, C], axis=1), Ep, Gp)     # [Ep, Gp]

    # Fold the filter-net bias into the weight via the extra C column.
    wnn_aug = _pad3(jnp.concatenate([wnn, bnn], axis=1), Gp, Fp)    # [L, Gp, Fp]
    win_p, bin_p = _pad3(win, Hp, Fp), _pad3(bin_, 1, Fp)
    wout_p, bout_p = _pad3(wout, Fp, Hp), _pad3(bout, 1, Hp)
    wlin_p, blin_p = _pad3(wlin, Hp, Hp), _pad3(blin, 1, Hp)

    # src as a column (drives the [Ec, Np] gather one-hot), dst as a row (drives
    # the already-transposed [Np, Ec] scatter one-hot) -> no in-kernel relayout.
    src = jnp.pad(edge_index[0].astype(jnp.int32), (0, Ep - E)).reshape(Ep, 1)
    dst = jnp.pad(edge_index[1].astype(jnp.int32), (0, Ep - E)).reshape(1, Ep)

    # ---- block specs ----
    def per_l(shape):
        return pl.BlockSpec((None,) + shape, lambda l, e: (l,) + (0,) * len(shape))

    x0_spec = pl.BlockSpec((Np, Hp), lambda l, e: (0, 0),
                           pipeline_mode=pl.Buffered(1))   # constant: single buffer
    src_spec = pl.BlockSpec((Ec, 1), lambda l, e: (e, 0))
    dst_spec = pl.BlockSpec((1, Ec), lambda l, e: (0, e))
    gC_spec = pl.BlockSpec((Ec, Gp), lambda l, e: (e, 0))

    # ---- advisory cost / VMEM budget ----
    flops = L * 2 * (Ep * Gp * Fp + 2 * Ep * Np * Fp
                     + Np * Hp * Fp + Np * Fp * Hp + Np * Hp * Hp)
    per_layer_w = 4 * (Gp * Fp + Hp * Fp + Fp + Fp * Hp + Hp + Hp * Hp + Hp)
    io_bytes = 4 * (2 * Np * Hp + Ep * Gp + 2 * Ep)
    cost = pl.CostEstimate(flops=int(flops),
                           transcendentals=int(L * Np * Hp),
                           bytes_accessed=int(L * per_layer_w + io_bytes))

    per_chunk_in = 4 * (Ec * Gp + 2 * Ec * 128)       # gC + lane-padded src/dst
    resident = 4 * (2 * Np * Hp + 2 * Np * Fp)        # x0 + out + xf/agg scratch
    onehot_tmp = 2 * 2 * Ec * Np                      # bf16 gather/scatter values
    vmem_need = 2 * per_layer_w + 2 * per_chunk_in + resident + onehot_tmp
    vmem_limit = int(min(_vmem_ceiling(), max(16 << 20, 2 * vmem_need)))

    kernel = partial(schnet_kernel, math.log(2.0))
    out = pl.pallas_call(
        kernel,
        out_shape=jax.ShapeDtypeStruct((Np, Hp), jnp.float32),
        grid_spec=pltpu.PrefetchScalarGridSpec(
            num_scalar_prefetch=0,
            grid=(L, n_chunks),
            in_specs=[
                x0_spec,                # pre-embedded node features (read at (0,0))
                src_spec, dst_spec,     # edge indices, per chunk
                gC_spec,                # hoisted C*gauss (+C column), per chunk
                per_l((Gp, Fp)),        # [wnn; bnn]
                per_l((Hp, Fp)), per_l((1, Fp)),    # input linear
                per_l((Fp, Hp)), per_l((1, Hp)),    # output linear
                per_l((Hp, Hp)), per_l((1, Hp)),    # block linear
            ],
            out_specs=pl.BlockSpec((Np, Hp), lambda l, e: (0, 0)),
            scratch_shapes=[pltpu.VMEM((Np, Fp), jnp.float32),   # xf  (per layer)
                            pltpu.VMEM((Np, Fp), jnp.float32)],  # agg accumulator
        ),
        compiler_params=pltpu.CompilerParams(
            dimension_semantics=("arbitrary", "arbitrary"),
            vmem_limit_bytes=vmem_limit),
        cost_estimate=cost,
        input_output_aliases={0: 0},    # x0's HBM buffer is reused for the output
    )(x0, src, dst, gC,
      wnn_aug, win_p, bin_p, wout_p, bout_p, wlin_p, blin_p)
    return out[:N, :H]


# ----------------------- pure-JAX reference (for checking) ------------------
def schnet_reference(atomic_numbers, edge_index, edge_attr, params, cutoff):
    emb = params["emb"]
    x = emb[atomic_numbers.astype(jnp.int32)]
    off = params["offsets"]
    G = off.shape[1]
    delta = cutoff / (G - 1)
    coeff = -0.5 / (delta * delta)
    dist = edge_attr.reshape(-1, 1).astype(jnp.float32)
    gauss = jnp.exp(coeff * (dist - off) ** 2)
    C = 0.5 * (jnp.cos(dist * jnp.pi / cutoff) + 1.0)
    src, dst = edge_index[0], edge_index[1]
    N = x.shape[0]
    L = params["wnn"].shape[0]
    for l in range(L):
        W = (gauss @ params["wnn"][l] + params["bnn"][l]) * C
        xf = x @ params["win"][l] + params["bin"][l]
        msg = xf[src] * W
        agg = jnp.zeros((N, msg.shape[1]), msg.dtype).at[dst].add(msg)
        xo = agg @ params["wout"][l] + params["bout"][l]
        xo = jax.nn.softplus(xo) - math.log(2.0)
        xo = xo @ params["wlin"][l] + params["blin"][l]
        x = x + xo
    return x


# ------------------------- deterministic parameter init ---------------------
def init_params(key, V, H, F, G, L, cutoff):
    keys = jax.random.split(key, 5)
    emb = jax.random.normal(keys[0], (V, H), jnp.float32)
    emb = emb.at[0].set(0.0)               # padding_idx=0

    def linear(k, fan_in, fan_out):
        bound = 1.0 / math.sqrt(fan_in)
        kw, kb = jax.random.split(k)
        w = jax.random.uniform(kw, (fan_in, fan_out), jnp.float32, -bound, bound)
        b = jax.random.uniform(kb, (1, fan_out), jnp.float32, -bound, bound)
        return w, b

    def stack(k, fan_in, fan_out):
        ws, bs = [], []
        for kk in jax.random.split(k, L):
            w, b = linear(kk, fan_in, fan_out)
            ws.append(w)
            bs.append(b)
        return jnp.stack(ws), jnp.stack(bs)

    wnn, bnn = stack(keys[1], G, F)        # ConvCF.nn    : Linear(G -> F)
    win, bin_ = stack(keys[2], H, F)       # ConvCF.input : Linear(H -> F)
    wout, bout = stack(keys[3], F, H)      # ConvCF.output: Linear(F -> H)
    wlin, blin = stack(keys[4], H, H)      # InteractionBlock.lin : Linear(H -> H)
    offsets = jnp.linspace(0.0, cutoff, G).reshape(1, G).astype(jnp.float32)
    return dict(emb=emb, offsets=offsets, wnn=wnn, bnn=bnn, win=win, bin=bin_,
                wout=wout, bout=bout, wlin=wlin, blin=blin)


if __name__ == "__main__":
    # Small shapes consistent with the module (hidden/filters shrunk from 128).
    H, F, G, L = 32, 32, 16, 2
    V = 100          # nn.Embedding(100, H) with padding_idx=0
    cutoff = 4.5
    N, E = 8, 200    # nodes, edges; E > 128 exercises the 2-chunk edge pipeline

    key = jax.random.PRNGKey(0)
    kp, ka, ks, kd, ke = jax.random.split(key, 5)
    params = init_params(kp, V, H, F, G, L, cutoff)

    atomic_numbers = jax.random.randint(ka, (N,), 1, 100, jnp.int32)
    src = jax.random.randint(ks, (E,), 0, N, jnp.int32)
    dst = jax.random.randint(kd, (E,), 0, N, jnp.int32)
    edge_index = jnp.stack([src, dst])                      # [2, E]
    edge_attr = jax.random.uniform(ke, (E, 1), jnp.float32, 0.1, cutoff)

    fwd = jax.jit(partial(schnet_forward, cutoff=cutoff, edge_chunk=128))
    out = jax.block_until_ready(fwd(atomic_numbers, edge_index, edge_attr, params))

    ref = schnet_reference(atomic_numbers, edge_index, edge_attr, params, cutoff)
    assert out.shape == (N, H)
    # bf16 rounding of xf/msg on the MXU gather/scatter is the only precision
    # loss (one-hots are exact); ~1e-3 rel per layer -> 2e-2 tolerance at L=2.
    np.testing.assert_allclose(np.asarray(out), np.asarray(ref),
                               atol=2e-2, rtol=2e-2)
    print("KERNEL_OK")
</pallas_src>

<mosaic_0001>
module attributes {stable_mosaic.version = 11 : i64} {
  func.func @schnet_kernel(%arg0: i32, %arg1: i32, %arg2: memref<128x128xf32, #tpu.memory_space<vmem>>, %arg3: memref<128x1xi32, #tpu.memory_space<vmem>>, %arg4: memref<1x128xi32, #tpu.memory_space<vmem>>, %arg5: memref<128x128xf32, #tpu.memory_space<vmem>>, %arg6: memref<1x128x128xf32, #tpu.memory_space<vmem>>, %arg7: memref<1x128x128xf32, #tpu.memory_space<vmem>>, %arg8: memref<1x1x128xf32, #tpu.memory_space<vmem>>, %arg9: memref<1x128x128xf32, #tpu.memory_space<vmem>>, %arg10: memref<1x1x128xf32, #tpu.memory_space<vmem>>, %arg11: memref<1x128x128xf32, #tpu.memory_space<vmem>>, %arg12: memref<1x1x128xf32, #tpu.memory_space<vmem>>, %arg13: memref<128x128xf32, #tpu.memory_space<vmem>>, %arg14: memref<128x128xf32, #tpu.memory_space<vmem>>, %arg15: memref<128x128xf32, #tpu.memory_space<vmem>>) attributes {dimension_semantics = [#tpu.dimension_semantics<arbitrary>, #tpu.dimension_semantics<arbitrary>], iteration_bounds = array<i64: 2, 2>, scalar_prefetch = 0 : i64, scratch_operands = 2 : i64, tpu.core_type = #tpu.core_type<tc>, window_params = [{pipeline_mode = #tpu.pipeline_mode<synchronous>, transform_indices = @transform_0, window_bounds = array<i64: 128, 128>}, {transform_indices = @transform_1, window_bounds = array<i64: 128, 1>}, {transform_indices = @transform_2, window_bounds = array<i64: 1, 128>}, {transform_indices = @transform_3, window_bounds = array<i64: 128, 128>}, {transform_indices = @transform_4, window_bounds = array<i64: 1, 128, 128>}, {transform_indices = @transform_5, window_bounds = array<i64: 1, 128, 128>}, {transform_indices = @transform_6, window_bounds = array<i64: 1, 1, 128>}, {transform_indices = @transform_7, window_bounds = array<i64: 1, 128, 128>}, {transform_indices = @transform_8, window_bounds = array<i64: 1, 1, 128>}, {transform_indices = @transform_9, window_bounds = array<i64: 1, 128, 128>}, {transform_indices = @transform_10, window_bounds = array<i64: 1, 1, 128>}, {pipeline_mode = #tpu.pipeline_mode<synchronous>, transform_indices = @transform_11, window_bounds = array<i64: 128, 128>}]} {
    %c0_i32 = arith.constant 0 : i32
    %0 = arith.cmpi eq, %arg0, %c0_i32 : i32
    %c0_i32_0 = arith.constant 0 : i32
    %1 = arith.cmpi eq, %arg1, %c0_i32_0 : i32
    %2 = arith.andi %0, %1 : i1
    %3 = arith.extui %2 : i1 to i32
    %c0_i32_1 = arith.constant 0 : i32
    %4 = arith.cmpi ne, %3, %c0_i32_1 : i32
    scf.if %4 {
      %c0_21 = arith.constant 0 : index
      %c0_22 = arith.constant 0 : index
      %38 = vector.load %arg2[%c0_21, %c0_22] : memref<128x128xf32, #tpu.memory_space<vmem>>, vector<128x128xf32>
      %c0_23 = arith.constant 0 : index
      %c0_24 = arith.constant 0 : index
      %39 = vector.load %arg13[%c0_23, %c0_24] : memref<128x128xf32, #tpu.memory_space<vmem>>, vector<128x128xf32>
      tpu.vector_store %arg13[%c0_23, %c0_24], %38 {strides = array<i32>} : memref<128x128xf32, #tpu.memory_space<vmem>>, vector<128x128xf32>,
    } else {
    }
    %c0_i32_2 = arith.constant 0 : i32
    %5 = arith.cmpi eq, %arg1, %c0_i32_2 : i32
    %6 = arith.extui %5 : i1 to i32
    %c0_i32_3 = arith.constant 0 : i32
    %7 = arith.cmpi ne, %6, %c0_i32_3 : i32
    scf.if %7 {
      %c0_21 = arith.constant 0 : index
      %c0_22 = arith.constant 0 : index
      %38 = vector.load %arg13[%c0_21, %c0_22] : memref<128x128xf32, #tpu.memory_space<vmem>>, vector<128x128xf32>
      %c0_23 = arith.constant 0 : index
      %c0_24 = arith.constant 0 : index
      %c0_25 = arith.constant 0 : index
      %39 = vector.load %arg7[%c0_23, %c0_24, %c0_25] : memref<1x128x128xf32, #tpu.memory_space<vmem>>, vector<1x128x128xf32>
      %40 = vector.shape_cast %39 : vector<1x128x128xf32> to vector<128x128xf32>
      %cst_26 = arith.constant dense<0.000000e+00> : vector<128x128xf32>
      %41 = tpu.matmul %38, %40, %cst_26 {dimension_numbers = #tpu.dot_dimension_numbers<[1], [0], [0], [1], [0, 0, 1, 1], [], []>} : vector<128x128xf32>, vector<128x128xf32>, vector<128x128xf32> -> vector<128x128xf32>
      %c0_27 = arith.constant 0 : index
      %c0_28 = arith.constant 0 : index
      %c0_29 = arith.constant 0 : index
      %42 = vector.load %arg8[%c0_27, %c0_28, %c0_29] : memref<1x1x128xf32, #tpu.memory_space<vmem>>, vector<1x1x128xf32>
      %43 = vector.shape_cast %42 : vector<1x1x128xf32> to vector<1x128xf32>
      %44 = vector.broadcast %43 : vector<1x128xf32> to vector<128x128xf32>
      %45 = arith.addf %41, %44 : vector<128x128xf32>
      %c0_30 = arith.constant 0 : index
      %c0_31 = arith.constant 0 : index
      %46 = vector.load %arg14[%c0_30, %c0_31] : memref<128x128xf32, #tpu.memory_space<vmem>>, vector<128x128xf32>
      tpu.vector_store %arg14[%c0_30, %c0_31], %45 {strides = array<i32>} : memref<128x128xf32, #tpu.memory_space<vmem>>, vector<128x128xf32>,
      %cst_32 = arith.constant 0.000000e+00 : f32
      %47 = vector.broadcast %cst_32 : f32 to vector<128x128xf32>
      %c0_33 = arith.constant 0 : index
      %c0_34 = arith.constant 0 : index
      %48 = vector.load %arg15[%c0_33, %c0_34] : memref<128x128xf32, #tpu.memory_space<vmem>>, vector<128x128xf32>
      tpu.vector_store %arg15[%c0_33, %c0_34], %47 {strides = array<i32>} : memref<128x128xf32, #tpu.memory_space<vmem>>, vector<128x128xf32>,
    } else {
    }
    %c0 = arith.constant 0 : index
    %c0_4 = arith.constant 0 : index
    %8 = vector.load %arg5[%c0, %c0_4] : memref<128x128xf32, #tpu.memory_space<vmem>>, vector<128x128xf32>
    %c0_5 = arith.constant 0 : index
    %c0_6 = arith.constant 0 : index
    %c0_7 = arith.constant 0 : index
    %9 = vector.load %arg6[%c0_5, %c0_6, %c0_7] : memref<1x128x128xf32, #tpu.memory_space<vmem>>, vector<1x128x128xf32>
    %10 = vector.shape_cast %9 : vector<1x128x128xf32> to vector<128x128xf32>
    %cst = arith.constant dense<0.000000e+00> : vector<128x128xf32>
    %11 = tpu.matmul %8, %10, %cst {dimension_numbers = #tpu.dot_dimension_numbers<[1], [0], [0], [1], [0, 0, 1, 1], [], []>} : vector<128x128xf32>, vector<128x128xf32>, vector<128x128xf32> -> vector<128x128xf32>
    %12 = tpu.iota {dimensions = array<i32: 1>} : vector<128x128xi32>
    %c0_8 = arith.constant 0 : index
    %c0_9 = arith.constant 0 : index
    %13 = vector.load %arg3[%c0_8, %c0_9] : memref<128x1xi32, #tpu.memory_space<vmem>>, vector<128x1xi32>
    %14 = vector.broadcast %13 : vector<128x1xi32> to vector<128x128xi32>
    %15 = arith.cmpi eq, %12, %14 : vector<128x128xi32>
    %16 = arith.extui %15 : vector<128x128xi1> to vector<128x128xi32>
    %17 = arith.sitofp %16 : vector<128x128xi32> to vector<128x128xf32>
    %18 = arith.truncf %17 : vector<128x128xf32> to vector<128x128xbf16>
    %19 = tpu.iota {dimensions = array<i32: 0>} : vector<128x128xi32>
    %c0_10 = arith.constant 0 : index
    %c0_11 = arith.constant 0 : index
    %20 = vector.load %arg4[%c0_10, %c0_11] : memref<1x128xi32, #tpu.memory_space<vmem>>, vector<1x128xi32>
    %21 = vector.broadcast %20 : vector<1x128xi32> to vector<128x128xi32>
    %22 = arith.cmpi eq, %19, %21 : vector<128x128xi32>
    %23 = arith.extui %22 : vector<128x128xi1> to vector<128x128xi32>
    %24 = arith.sitofp %23 : vector<128x128xi32> to vector<128x128xf32>
    %25 = arith.truncf %24 : vector<128x128xf32> to vector<128x128xbf16>
    %c0_12 = arith.constant 0 : index
    %c0_13 = arith.constant 0 : index
    %26 = vector.load %arg14[%c0_12, %c0_13] : memref<128x128xf32, #tpu.memory_space<vmem>>, vector<128x128xf32>
    %27 = arith.truncf %26 : vector<128x128xf32> to vector<128x128xbf16>
    %cst_14 = arith.constant dense<0.000000e+00> : vector<128x128xf32>
    %28 = tpu.matmul %18, %27, %cst_14 {dimension_numbers = #tpu.dot_dimension_numbers<[1], [0], [0], [1], [0, 0, 1, 1], [], []>} : vector<128x128xbf16>, vector<128x128xbf16>, vector<128x128xf32> -> vector<128x128xf32>
    %29 = arith.mulf %28, %11 : vector<128x128xf32>
    %30 = arith.truncf %29 : vector<128x128xf32> to vector<128x128xbf16>
    %c0_15 = arith.constant 0 : index
    %c0_16 = arith.constant 0 : index
    %31 = vector.load %arg15[%c0_15, %c0_16] : memref<128x128xf32, #tpu.memory_space<vmem>>, vector<128x128xf32>
    %cst_17 = arith.constant dense<0.000000e+00> : vector<128x128xf32>
    %32 = tpu.matmul %25, %30, %cst_17 {dimension_numbers = #tpu.dot_dimension_numbers<[1], [0], [0], [1], [0, 0, 1, 1], [], []>} : vector<128x128xbf16>, vector<128x128xbf16>, vector<128x128xf32> -> vector<128x128xf32>
    %33 = arith.addf %31, %32 : vector<128x128xf32>
    %c0_18 = arith.constant 0 : index
    %c0_19 = arith.constant 0 : index
    %34 = vector.load %arg15[%c0_18, %c0_19] : memref<128x128xf32, #tpu.memory_space<vmem>>, vector<128x128xf32>
    tpu.vector_store %arg15[%c0_18, %c0_19], %33 {strides = array<i32>} : memref<128x128xf32, #tpu.memory_space<vmem>>, vector<128x128xf32>,
    %c1_i32 = arith.constant 1 : i32
    %35 = arith.cmpi eq, %arg1, %c1_i32 : i32
    %36 = arith.extui %35 : i1 to i32
    %c0_i32_20 = arith.constant 0 : i32
    %37 = arith.cmpi ne, %36, %c0_i32_20 : i32
    scf.if %37 {
      %c0_21 = arith.constant 0 : index
      %c0_22 = arith.constant 0 : index
      %38 = vector.load %arg15[%c0_21, %c0_22] : memref<128x128xf32, #tpu.memory_space<vmem>>, vector<128x128xf32>
      %c0_23 = arith.constant 0 : index
      %c0_24 = arith.constant 0 : index
      %c0_25 = arith.constant 0 : index
      %39 = vector.load %arg9[%c0_23, %c0_24, %c0_25] : memref<1x128x128xf32, #tpu.memory_space<vmem>>, vector<1x128x128xf32>
      %40 = vector.shape_cast %39 : vector<1x128x128xf32> to vector<128x128xf32>
      %cst_26 = arith.constant dense<0.000000e+00> : vector<128x128xf32>
      %41 = tpu.matmul %38, %40, %cst_26 {dimension_numbers = #tpu.dot_dimension_numbers<[1], [0], [0], [1], [0, 0, 1, 1], [], []>} : vector<128x128xf32>, vector<128x128xf32>, vector<128x128xf32> -> vector<128x128xf32>
      %c0_27 = arith.constant 0 : index
      %c0_28 = arith.constant 0 : index
      %c0_29 = arith.constant 0 : index
      %42 = vector.load %arg10[%c0_27, %c0_28, %c0_29] : memref<1x1x128xf32, #tpu.memory_space<vmem>>, vector<1x1x128xf32>
      %43 = vector.shape_cast %42 : vector<1x1x128xf32> to vector<1x128xf32>
      %44 = vector.broadcast %43 : vector<1x128xf32> to vector<128x128xf32>
      %45 = arith.addf %41, %44 : vector<128x128xf32>
      %cst_30 = arith.constant 0.000000e+00 : f32
      %46 = vector.broadcast %cst_30 : f32 to vector<128x128xf32>
      %47 = arith.maximumf %45, %46 : vector<128x128xf32>
      %48 = math.absf %45 : vector<128x128xf32>
      %cst_31 = arith.constant 0.000000e+00 : f32
      %49 = vector.broadcast %cst_31 : f32 to vector<128x128xf32>
      %50 = arith.subf %49, %48 : vector<128x128xf32>
      %51 = math.exp %50 : vector<128x128xf32>
      %52 = math.log1p %51 : vector<128x128xf32>
      %53 = arith.addf %47, %52 : vector<128x128xf32>
      %cst_32 = arith.constant 0.693147182 : f32
      %54 = vector.broadcast %cst_32 : f32 to vector<128x128xf32>
      %55 = arith.subf %53, %54 : vector<128x128xf32>
      %c0_33 = arith.constant 0 : index
      %c0_34 = arith.constant 0 : index
      %c0_35 = arith.constant 0 : index
      %56 = vector.load %arg11[%c0_33, %c0_34, %c0_35] : memref<1x128x128xf32, #tpu.memory_space<vmem>>, vector<1x128x128xf32>
      %57 = vector.shape_cast %56 : vector<1x128x128xf32> to vector<128x128xf32>
      %cst_36 = arith.constant dense<0.000000e+00> : vector<128x128xf32>
      %58 = tpu.matmul %55, %57, %cst_36 {dimension_numbers = #tpu.dot_dimension_numbers<[1], [0], [0], [1], [0, 0, 1, 1], [], []>} : vector<128x128xf32>, vector<128x128xf32>, vector<128x128xf32> -> vector<128x128xf32>
      %c0_37 = arith.constant 0 : index
      %c0_38 = arith.constant 0 : index
      %c0_39 = arith.constant 0 : index
      %59 = vector.load %arg12[%c0_37, %c0_38, %c0_39] : memref<1x1x128xf32, #tpu.memory_space<vmem>>, vector<1x1x128xf32>
      %60 = vector.shape_cast %59 : vector<1x1x128xf32> to vector<1x128xf32>
      %61 = vector.broadcast %60 : vector<1x128xf32> to vector<128x128xf32>
      %62 = arith.addf %58, %61 : vector<128x128xf32>
      %c0_40 = arith.constant 0 : index
      %c0_41 = arith.constant 0 : index
      %63 = vector.load %arg13[%c0_40, %c0_41] : memref<128x128xf32, #tpu.memory_space<vmem>>, vector<128x128xf32>
      %64 = arith.addf %63, %62 : vector<128x128xf32>
      %c0_42 = arith.constant 0 : index
      %c0_43 = arith.constant 0 : index
      %65 = vector.load %arg13[%c0_42, %c0_43] : memref<128x128xf32, #tpu.memory_space<vmem>>, vector<128x128xf32>
      tpu.vector_store %arg13[%c0_42, %c0_43], %64 {strides = array<i32>} : memref<128x128xf32, #tpu.memory_space<vmem>>, vector<128x128xf32>,
    } else {
    }
    return
  }
  func.func @transform_0(%arg0: i32, %arg1: i32) -> (i32, i32) {
    %c0_i32 = arith.constant 0 : i32
    %c0_i32_0 = arith.constant 0 : i32
    %c0_i32_1 = arith.constant 0 : i32
    return %c0_i32, %c0_i32_0 : i32, i32
  }
  func.func @transform_1(%arg0: i32, %arg1: i32) -> (i32, i32) {
    %c0_i32 = arith.constant 0 : i32
    %c0_i32_0 = arith.constant 0 : i32
    return %arg1, %c0_i32 : i32, i32
  }
  func.func @transform_2(%arg0: i32, %arg1: i32) -> (i32, i32) {
    %c0_i32 = arith.constant 0 : i32
    %c0_i32_0 = arith.constant 0 : i32
    return %c0_i32, %arg1 : i32, i32
  }
  func.func @transform_3(%arg0: i32, %arg1: i32) -> (i32, i32) {
    %c0_i32 = arith.constant 0 : i32
    %c0_i32_0 = arith.constant 0 : i32
    return %arg1, %c0_i32 : i32, i32
  }
  func.func @transform_4(%arg0: i32, %arg1: i32) -> (i32, i32, i32) {
    %c0_i32 = arith.constant 0 : i32
    %c0_i32_0 = arith.constant 0 : i32
    %c0_i32_1 = arith.constant 0 : i32
    return %arg0, %c0_i32, %c0_i32_0 : i32, i32, i32
  }
  func.func @transform_5(%arg0: i32, %arg1: i32) -> (i32, i32, i32) {
    %c0_i32 = arith.constant 0 : i32
    %c0_i32_0 = arith.constant 0 : i32
    %c0_i32_1 = arith.constant 0 : i32
    return %arg0, %c0_i32, %c0_i32_0 : i32, i32, i32
  }
  func.func @transform_6(%arg0: i32, %arg1: i32) -> (i32, i32, i32) {
    %c0_i32 = arith.constant 0 : i32
    %c0_i32_0 = arith.constant 0 : i32
    %c0_i32_1 = arith.constant 0 : i32
    return %arg0, %c0_i32, %c0_i32_0 : i32, i32, i32
  }
  func.func @transform_7(%arg0: i32, %arg1: i32) -> (i32, i32, i32) {
    %c0_i32 = arith.constant 0 : i32
    %c0_i32_0 = arith.constant 0 : i32
    %c0_i32_1 = arith.constant 0 : i32
    return %arg0, %c0_i32, %c0_i32_0 : i32, i32, i32
  }
  func.func @transform_8(%arg0: i32, %arg1: i32) -> (i32, i32, i32) {
    %c0_i32 = arith.constant 0 : i32
    %c0_i32_0 = arith.constant 0 : i32
    %c0_i32_1 = arith.constant 0 : i32
    return %arg0, %c0_i32, %c0_i32_0 : i32, i32, i32
  }
  func.func @transform_9(%arg0: i32, %arg1: i32) -> (i32, i32, i32) {
    %c0_i32 = arith.constant 0 : i32
    %c0_i32_0 = arith.constant 0 : i32
    %c0_i32_1 = arith.constant 0 : i32
    return %arg0, %c0_i32, %c0_i32_0 : i32, i32, i32
  }
  func.func @transform_10(%arg0: i32, %arg1: i32) -> (i32, i32, i32) {
    %c0_i32 = arith.constant 0 : i32
    %c0_i32_0 = arith.constant 0 : i32
    %c0_i32_1 = arith.constant 0 : i32
    return %arg0, %c0_i32, %c0_i32_0 : i32, i32, i32
  }
  func.func @transform_11(%arg0: i32, %arg1: i32) -> (i32, i32) {
    %c0_i32 = arith.constant 0 : i32
    %c0_i32_0 = arith.constant 0 : i32
    %c0_i32_1 = arith.constant 0 : i32
    return %c0_i32, %c0_i32_0 : i32, i32
  }
}

</mosaic_0001>

<bundles_post_ra>
// kernel: schnet_forward.1
= control target key start
LH: loop header
LB: loop body
LE: loop exit
PB: predicated region body
PF: predicated region fallthrough
CT: control target
= control target key end

     0   :  { %s3080_s17 = smov 0   ;;  %s3082_s18 = smov 0   ;;  %s3879_s0 = inlined_call_operand.vmem [shape: f32[128,128], index: 0, kind: input, shape index: {}, may-alias: {0,11}]   ;;  %s3880_s1 = inlined_call_operand.vmem [shape: s32[256,1], index: 1, kind: input, shape index: {}]   ;;  %s3881_s2 = inlined_call_operand.vmem [shape: s32[1,256], index: 2, kind: input, shape index: {}]   ;;  %s3882_s3 = inlined_call_operand.vmem [shape: f32[256,128], index: 3, kind: input, shape index: {}]   ;;  %s3883_s4 = inlined_call_operand.vmem [shape: f32[2,128,128], index: 4, kind: input, shape index: {}]   ;;  %s3884_s5 = inlined_call_operand.vmem [shape: f32[2,128,128], index: 5, kind: input, shape index: {}]   ;;  %s3885_s6 = inlined_call_operand.vmem [shape: f32[2,1,128], index: 6, kind: input, shape index: {}]   ;;  %s3886_s7 = inlined_call_operand.vmem [shape: f32[2,128,128], index: 7, kind: input, shape index: {}]   ;;  %s3887_s8 = inlined_call_operand.vmem [shape: f32[2,1,128], index: 8, kind: input, shape index: {}]   ;;  %s3888_s9 = inlined_call_operand.vmem [shape: f32[2,128,128], index: 9, kind: input, shape index: {}]   ;;  %s3889_s10 = inlined_call_operand.vmem [shape: f32[2,1,128], index: 10, kind: input, shape index: {}]   ;;  %s3890_s11 = inlined_call_operand.vmem [shape: f32[128,128], index: 11, kind: output, shape index: {}, may-alias: {0,11}]  }
   0x1   :  { %3893 = sst [smem:[#allocation8_spill]] %s3880_s1  ;;  %s3084_s19 = smov 0  }
   0x2   :  { %3894 = sst [smem:[#allocation9_spill]] %s3882_s3  ;;  %s3086_s20 = smov 0  }
   0x3   :  { %3895 = sst [smem:[#allocation10_spill]] %s3883_s4  ;;  %s3088_s21 = smov 0  }
   0x4   :  { %3896 = sst [smem:[#allocation11_spill]] %s3884_s5 }
   0x5 LB: > { %3897 = sst [smem:[#allocation4_spill]] %s3007_s19  ;;  %s30_s22 = sadd.s32 1, %s3007_s19  ;;  %s3015_s21 = sphi %s3088_s21, %s21_s21   ;;  %s3011_s20 = sphi %s3086_s20, %s3941_s20   ;;  %s3007_s19 = sphi %s3084_s19, %s3940_s19   ;;  %s3003_s18 = sphi %s3082_s18, %s3939_s18   ;;  %s2999_s17 = sphi %s3080_s17, %s3938_s17  }
   0x6   : > { %3898 = sst [smem:[#allocation5_spill]] %s3011_s20  ;;  %s33_s23 = sadd.s32 1, %s3011_s20 }
   0x7   : > { %p31_p0 = scmp.ge.s32.totalorder %s30_s22, 2  ;;  %p2267_p1 = scmp.ge.s32.totalorder %s3015_s21, 1 }
   0x8   : > { %p428_p2 = scmp.lt.s32.totalorder %s3015_s21, 5 }
   0x9   : > { %s3943_s22 = smov (%p31_p0, %s30_s22), 0  ;;  %s3945_s23 = smov (!%p31_p0, %s33_s23), %s3011_s20 }
   0xa   : > { %3899 = sst [smem:[#allocation6_spill]] %s3943_s22  ;;  %p429_p3 = pnand %p2267_p1, %p428_p2 }
   0xb   : > { %p35_p4 = scmp.ge.s32.totalorder %s3945_s23, 2  ;;  %s2268_s24 = sshll.u32 (!%p429_p3), %s2999_s17, 4 }
   0xc   : > { %432 = sbr.rel (%p429_p3) target bundleno = 1441 (0x5a1), region = 64  ;;  %p506_p5 = scmp.lt.s32.totalorder (!%p429_p3), %s2999_s17, 1 }
   0xd   : > { %s3947_s23 = smov (%p35_p4, %s3945_s23), 0  ;;  %p501_p6 = scmp.lt.s32.totalorder (!%p429_p3), %s2268_s24, 31 }
   0xe   : > { %3900 = sst [smem:[#allocation7_spill]] %s3947_s23  ;;  %p515_p7 = scmp.lt.s32.totalorder (!%p429_p3), %s3003_s18, 1 }
   0xf   : > { %p545_p8 = scmp.eq.s32.totalorder (!%p429_p3), %s3003_s18, 0  ;;  %p546_p9 = scmp.eq.s32.totalorder (!%p429_p3), %s2999_s17, 0 }
  0x10   : > { %s3901_s1 = sld [smem:[#allocation8_spill]] (!%p429_p3) }
  0x11   : > { %s3115_s25 = scalar_select %p506_p5, %s2999_s17, 1 }
  0x12   : > { %s3949_s24 = smov (!%p501_p6, %s2268_s24), 31  ;;  %s3902_s3 = sld [smem:[#allocation9_spill]] }
  0x13   : > { %s2269_s29 = sshll.u32 %s3949_s24, 3  ;;  %s3951_s18 = smov (!%p515_p7, %s3003_s18), 1 }
  0x14   : > { %p547_p10 = pnand %p546_p9, %p545_p8  ;;  %s2368_s26 = sshll.u32 %s3951_s18, 7 }
  0x15   : > { %s3903_s4 = sld [smem:[#allocation10_spill]]  ;;  %s3152_s22 = scalar_lea.vmem %s3886_s7, %s2368_s26 }
  0x16   : > { %s3125_s13 = scalar_lea.vmem %s3901_s1, %s2269_s29  ;;  %s3904_s5 = sld [smem:[#allocation11_spill]] }
  0x17   : > { %s535_s24 = scalar_lea.vmem %s3887_s8, %s3951_s18  ;;  %s3161_s30 = scalar_lea.vmem %s3888_s9, %s2368_s26 }
  0x18   : > { %s3130_s16 = scalar_lea.vmem %s3902_s3, %s2269_s29  ;;  %550 = sbr.rel (%p547_p10) target bundleno = 76 (0x4c), region = 68 }
  0x1b   : > { %s3142_s1 = scalar_lea.vmem %s3903_s4, %s2368_s26 }
  0x1c   : > { %s3147_s15 = scalar_lea.vmem %s3904_s5, %s2368_s26 }
  0x1d   : > { %v551_v0 = vld [vmem:[%s3879_s0] sm:$0xff]  ;;  %v552_v1 = vld [vmem:[%s3879_s0 + $0x8] sm:$0xff]  ;;  %v553_v2 = vld [vmem:[%s3879_s0 + $0x10] sm:$0xff] }
  0x1e   : > { %567 = vst [vmem:[%s3890_s11] sm:$0xff] %v551_v0  ;;  %568 = vst [vmem:[%s3890_s11 + $0x8] sm:$0xff] %v552_v1 }
  0x1f   : > { %569 = vst [vmem:[%s3890_s11 + $0x10] sm:$0xff] %v553_v2 }
  0x26   : > { %v554_v3 = vld [vmem:[%s3879_s0 + $0x18] sm:$0xff]  ;;  %v555_v4 = vld [vmem:[%s3879_s0 + $0x20] sm:$0xff]  ;;  %v556_v5 = vld [vmem:[%s3879_s0 + $0x28] sm:$0xff] }
  0x27   : > { %570 = vst [vmem:[%s3890_s11 + $0x18] sm:$0xff] %v554_v3  ;;  %571 = vst [vmem:[%s3890_s11 + $0x20] sm:$0xff] %v555_v4 }
  0x28   : > { %572 = vst [vmem:[%s3890_s11 + $0x28] sm:$0xff] %v556_v5 }
  0x2f   : > { %v557_v6 = vld [vmem:[%s3879_s0 + $0x30] sm:$0xff]  ;;  %v558_v7 = vld [vmem:[%s3879_s0 + $0x38] sm:$0xff]  ;;  %v559_v8 = vld [vmem:[%s3879_s0 + $0x40] sm:$0xff] }
  0x30   : > { %573 = vst [vmem:[%s3890_s11 + $0x30] sm:$0xff] %v557_v6  ;;  %574 = vst [vmem:[%s3890_s11 + $0x38] sm:$0xff] %v558_v7 }
  0x31   : > { %575 = vst [vmem:[%s3890_s11 + $0x40] sm:$0xff] %v559_v8 }
  0x38   : > { %v560_v9 = vld [vmem:[%s3879_s0 + $0x48] sm:$0xff]  ;;  %v561_v10 = vld [vmem:[%s3879_s0 + $0x50] sm:$0xff]  ;;  %v562_v11 = vld [vmem:[%s3879_s0 + $0x58] sm:$0xff] }
  0x39   : > { %576 = vst [vmem:[%s3890_s11 + $0x48] sm:$0xff] %v560_v9  ;;  %577 = vst [vmem:[%s3890_s11 + $0x50] sm:$0xff] %v561_v10 }
  0x3a   : > { %578 = vst [vmem:[%s3890_s11 + $0x58] sm:$0xff] %v562_v11 }
  0x41   : > { %v563_v12 = vld [vmem:[%s3879_s0 + $0x60] sm:$0xff]  ;;  %v564_v13 = vld [vmem:[%s3879_s0 + $0x68] sm:$0xff]  ;;  %v565_v14 = vld [vmem:[%s3879_s0 + $0x70] sm:$0xff] }
  0x42   : > { %579 = vst [vmem:[%s3890_s11 + $0x60] sm:$0xff] %v563_v12  ;;  %580 = vst [vmem:[%s3890_s11 + $0x68] sm:$0xff] %v564_v13 }
  0x43   : > { %581 = vst [vmem:[%s3890_s11 + $0x70] sm:$0xff] %v565_v14 }
  0x4a   : > { %v566_v15 = vld [vmem:[%s3879_s0 + $0x78] sm:$0xff] }
  0x4b   : > { %582 = vst [vmem:[%s3890_s11 + $0x78] sm:$0xff] %v566_v15 }
  0x4c PF: > { %p2280_p11 = scmp.ne.s32.totalorder %s2999_s17, 0 }
  0x4d   : > { %s3905_s12 = scalar_lea.vmem (!%p2280_p11), %s3885_s6, %s3951_s18 }
  0x4e   : > { %585 = sbr.rel (%p2280_p11) target bundleno = 327 (0x147), region = 72 }
  0x53   : > { %v617_v16 = vld [vmem:[%s3147_s15 + $0x78] sm:$0xff]  ;;  %v616_v17 = vld [vmem:[%s3147_s15 + $0x70] sm:$0xff]  ;;  %v615_v18 = vld [vmem:[%s3147_s15 + $0x68] sm:$0xff]  ;;  %v3017_v48 = vmov 0.0  }
  0x54   : > { %2532 = vmatprep.subr.mxu0 %v617_v16  ;;  %2820 = vmatprep.subr.mxu1 %v617_v16  ;;  %v614_v19 = vld [vmem:[%s3147_s15 + $0x60] sm:$0xff]  ;;  %v613_v20 = vld [vmem:[%s3147_s15 + $0x58] sm:$0xff]  ;;  %v612_v21 = vld [vmem:[%s3147_s15 + $0x50] sm:$0xff]  ;;  %786 = vst [vmem:[#allocation3 + $0x28] sm:$0xff] %v3017_v48 }
  0x55   : > { %2533 = vmatpush3.msra.mxu0 %v617_v16  ;;  %2836 = vmatpush3.msra.mxu1 %v617_v16  ;;  %v611_v22 = vld [vmem:[%s3147_s15 + $0x48] sm:$0xff]  ;;  %v610_v23 = vld [vmem:[%s3147_s15 + $0x40] sm:$0xff]  ;;  %v609_v24 = vld [vmem:[%s3147_s15 + $0x38] sm:$0xff]  ;;  %787 = vst [vmem:[#allocation3 + $0x68] sm:$0xff] %v3017_v48 }
  0x56   : > { %2534 = vmatprep.subr.mxu0 %v616_v17  ;;  %2821 = vmatprep.subr.mxu1 %v616_v17  ;;  %v608_v25 = vld [vmem:[%s3147_s15 + $0x30] sm:$0xff]  ;;  %v607_v26 = vld [vmem:[%s3147_s15 + $0x28] sm:$0xff]  ;;  %v606_v27 = vld [vmem:[%s3147_s15 + $0x20] sm:$0xff]  ;;  %788 = vst [vmem:[#allocation3 + $0x10] sm:$0xff] %v3017_v48 }
  0x57   : > { %2535 = vmatpush3.msra.mxu0 %v616_v17  ;;  %2837 = vmatpush3.msra.mxu1 %v616_v17  ;;  %v605_v28 = vld [vmem:[%s3147_s15 + $0x18] sm:$0xff]  ;;  %v604_v29 = vld [vmem:[%s3147_s15 + $0x10] sm:$0xff]  ;;  %v603_v30 = vld [vmem:[%s3147_s15 + $0x8] sm:$0xff]  ;;  %789 = vst [vmem:[#allocation3 + $0x40] sm:$0xff] %v3017_v48 }
  0x58   : > { %2536 = vmatprep.subr.mxu0 %v615_v18  ;;  %2822 = vmatprep.subr.mxu1 %v615_v18  ;;  %v602_v31 = vld [vmem:[%s3147_s15] sm:$0xff]  ;;  %v587_v34 = vld [vmem:[%s3890_s11 + $0x8] sm:$0xff]  ;;  %v588_v36 = vld [vmem:[%s3890_s11 + $0x10] sm:$0xff]  ;;  %790 = vst [vmem:[#allocation3 + $0x48] sm:$0xff] %v3017_v48 }
  0x59   : > { %2537 = vmatpush3.msra.mxu0 %v615_v18  ;;  %2838 = vmatpush3.msra.mxu1 %v615_v18  ;;  %v586_v32 = vld [vmem:[%s3890_s11] sm:$0xff]  ;;  %v595_v35 = vld [vmem:[%s3890_s11 + $0x48] sm:$0xff]  ;;  %v596_v37 = vld [vmem:[%s3890_s11 + $0x50] sm:$0xff]  ;;  %791 = vst [vmem:[#allocation3 + $0x30] sm:$0xff] %v3017_v48 }
  0x5a   : > { %2538 = vmatprep.subr.mxu0 %v614_v19  ;;  %2823 = vmatprep.subr.mxu1 %v614_v19  ;;  %v594_v33 = vld [vmem:[%s3890_s11 + $0x40] sm:$0xff]  ;;  %v589_v38 = vld [vmem:[%s3890_s11 + $0x18] sm:$0xff]  ;;  %v591_v42 = vld [vmem:[%s3890_s11 + $0x28] sm:$0xff]  ;;  %792 = vst [vmem:[#allocation3 + $0x70] sm:$0xff] %v3017_v48 }
  0x5b   : > { %2539 = vmatpush3.msra.mxu0 %v614_v19  ;;  %2839 = vmatpush3.msra.mxu1 %v614_v19  ;;  %v597_v39 = vld [vmem:[%s3890_s11 + $0x58] sm:$0xff]  ;;  %v590_v40 = vld [vmem:[%s3890_s11 + $0x20] sm:$0xff]  ;;  %v599_v43 = vld [vmem:[%s3890_s11 + $0x68] sm:$0xff]  ;;  %793 = vst [vmem:[#allocation3 + $0x38] sm:$0xff] %v3017_v48 }
  0x5c   : > { %2540 = vmatprep.subr.mxu0 %v613_v20  ;;  %2824 = vmatprep.subr.mxu1 %v613_v20  ;;  %v598_v41 = vld [vmem:[%s3890_s11 + $0x60] sm:$0xff]  ;;  %v592_v44 = vld [vmem:[%s3890_s11 + $0x30] sm:$0xff]  ;;  %v593_v46 = vld [vmem:[%s3890_s11 + $0x38] sm:$0xff]  ;;  %794 = vst [vmem:[#allocation3 + $0x20] sm:$0xff] %v3017_v48 }
  0x5d   : > { %2541 = vmatpush3.msra.mxu0 %v613_v20  ;;  %2840 = vmatpush3.msra.mxu1 %v613_v20  ;;  %v600_v45 = vld [vmem:[%s3890_s11 + $0x70] sm:$0xff]  ;;  %v601_v47 = vld [vmem:[%s3890_s11 + $0x78] sm:$0xff]  ;;  %795 = vst [vmem:[#allocation3 + $0x78] sm:$0xff] %v3017_v48  ;;  %796 = vst [vmem:[#allocation3 + $0x18] sm:$0xff] %v3017_v48 }
  0x5e   : > { %2542 = vmatprep.subr.mxu0 %v612_v21  ;;  %2825 = vmatprep.subr.mxu1 %v612_v21  ;;  %797 = vst [vmem:[#allocation3 + $0x58] sm:$0xff] %v3017_v48  ;;  %798 = vst [vmem:[#allocation3] sm:$0xff] %v3017_v48  ;;  %v2281_v49 = vld [vmem:[%s3905_s12] ss:$0 sm:$0xff] }
  0x5f   : > { %2543 = vmatpush3.msra.mxu0 %v612_v21  ;;  %2841 = vmatpush3.msra.mxu1 %v612_v21  ;;  %799 = vst [vmem:[#allocation3 + $0x8] sm:$0xff] %v3017_v48  ;;  %800 = vst [vmem:[#allocation3 + $0x60] sm:$0xff] %v3017_v48 }
  0x60   : > { %2544 = vmatprep.subr.mxu0 %v611_v22  ;;  %2826 = vmatprep.subr.mxu1 %v611_v22  ;;  %801 = vst [vmem:[#allocation3 + $0x50] sm:$0xff] %v3017_v48 }
  0x61   : > { %2545 = vmatpush3.msra.mxu0 %v611_v22  ;;  %2842 = vmatpush3.msra.mxu1 %v611_v22 }
  0x62   : > { %2546 = vmatprep.subr.mxu0 %v610_v23  ;;  %2827 = vmatprep.subr.mxu1 %v610_v23 }
  0x63   : > { %2547 = vmatpush3.msra.mxu0 %v610_v23  ;;  %2843 = vmatpush3.msra.mxu1 %v610_v23 }
  0x64   : > { %2548 = vmatprep.subr.mxu0 %v609_v24  ;;  %2828 = vmatprep.subr.mxu1 %v609_v24 }
  0x65   : > { %2549 = vmatpush3.msra.mxu0 %v609_v24  ;;  %2844 = vmatpush3.msra.mxu1 %v609_v24 }
  0x66   : > { %2550 = vmatprep.subr.mxu0 %v608_v25  ;;  %2829 = vmatprep.subr.mxu1 %v608_v25 }
  0x67   : > { %2551 = vmatpush3.msra.mxu0 %v608_v25  ;;  %2845 = vmatpush3.msra.mxu1 %v608_v25 }
  0x68   : > { %2552 = vmatprep.subr.mxu0 %v607_v26  ;;  %2830 = vmatprep.subr.mxu1 %v607_v26 }
  0x69   : > { %2553 = vmatpush3.msra.mxu0 %v607_v26  ;;  %2846 = vmatpush3.msra.mxu1 %v607_v26 }
  0x6a   : > { %2554 = vmatprep.subr.mxu0 %v606_v27  ;;  %2831 = vmatprep.subr.mxu1 %v606_v27 }
  0x6b   : > { %2555 = vmatpush3.msra.mxu0 %v606_v27  ;;  %2847 = vmatpush3.msra.mxu1 %v606_v27 }
  0x6c   : > { %2556 = vmatprep.subr.mxu0 %v605_v28  ;;  %2832 = vmatprep.subr.mxu1 %v605_v28 }
  0x6d   : > { %2557 = vmatpush3.msra.mxu0 %v605_v28  ;;  %2848 = vmatpush3.msra.mxu1 %v605_v28 }
  0x6e   : > { %2558 = vmatprep.subr.mxu0 %v604_v29  ;;  %2833 = vmatprep.subr.mxu1 %v604_v29 }
  0x6f   : > { %2559 = vmatpush3.msra.mxu0 %v604_v29  ;;  %2849 = vmatpush3.msra.mxu1 %v604_v29 }
  0x70   : > { %2560 = vmatprep.subr.mxu0 %v603_v30  ;;  %2834 = vmatprep.subr.mxu1 %v603_v30 }
  0x71   : > { %2561 = vmatpush3.msra.mxu0 %v603_v30  ;;  %2850 = vmatpush3.msra.mxu1 %v603_v30 }
  0x72   : > { %2562 = vmatprep.subr.mxu0 %v602_v31  ;;  %2835 = vmatprep.subr.mxu1 %v602_v31 }
  0x73   : > { %2563 = vmatpush3.msra.mxu0 %v602_v31  ;;  %2851 = vmatpush3.msra.mxu1 %v602_v31 }
  0x74   : > { %2564 = vmatprep.mubr.f32.mxu0 %v586_v32  ;;  %2576 = vmatprep.mubr.f32.mxu1 %v594_v33 }
  0x75   : > { %2565 = vmatmul.mubr.f32.vlgmr.msra.gmra.mxu0 %v587_v34  ;;  %2577 = vmatmul.mubr.f32.vlgmr.msra.gmra.mxu1 %v595_v35 }
  0x76   : > { %2567 = vmatprep.mubr.f32.mxu0 %v588_v36  ;;  %2579 = vmatprep.mubr.f32.mxu1 %v596_v37 }
  0x79   : > { %2568 = vmatmul.mubr.f32.gmra.mxu0 %v589_v38  ;;  %2580 = vmatmul.mubr.f32.gmra.mxu1 %v597_v39 }
  0x7a   : > { %2570 = vmatprep.mubr.f32.mxu0 %v590_v40  ;;  %2582 = vmatprep.mubr.f32.mxu1 %v598_v41 }
  0x7d   : > { %2571 = vmatmul.mubr.f32.gmra.mxu0 %v591_v42  ;;  %2583 = vmatmul.mubr.f32.gmra.mxu1 %v599_v43 }
  0x7e   : > { %2573 = vmatprep.mubr.f32.mxu0 %v592_v44  ;;  %2585 = vmatprep.mubr.f32.mxu1 %v600_v45 }
  0x81   : > { %2574 = vmatmul.mubr.f32.gmra.mxu0 %v593_v46  ;;  %2586 = vmatmul.mubr.f32.gmra.mxu1 %v601_v47 }
 0x135   : > { %v2566_v50 = vpop.f32.mrf.mxu0  ;;  %v2578_v51 = vpop.f32.mrf.mxu1 }
 0x136   : > { %v697_v52 = vadd.f32 %v2566_v50, %v2281_v49  ;;  %v737_v53 = vadd.f32 %v2578_v51, %v2281_v49 }
 0x137   : > { %v691_v54 = vpop.f32.mrf.mxu0  ;;  %v731_v55 = vpop.f32.mrf.mxu1 }
 0x138   : > { %771 = vst [vmem:[#allocation2] sm:$0xff] %v697_v52  ;;  %779 = vst [vmem:[#allocation2 + $0x20] sm:$0xff] %v737_v53  ;;  %v692_v56 = vadd.f32 %v2281_v49, %v691_v54  ;;  %v732_v57 = vadd.f32 %v2281_v49, %v731_v55 }
 0x139   : > { %v2569_v58 = vpop.f32.mrf.mxu0  ;;  %v2581_v59 = vpop.f32.mrf.mxu1 }
 0x13a   : > { %770 = vst [vmem:[#allocation2 + $0x30] sm:$0xff] %v692_v56  ;;  %778 = vst [vmem:[#allocation2 + $0x40] sm:$0xff] %v732_v57  ;;  %v707_v60 = vadd.f32 %v2569_v58, %v2281_v49  ;;  %v747_v61 = vadd.f32 %v2581_v59, %v2281_v49 }
 0x13b   : > { %v701_v62 = vpop.f32.mrf.mxu0  ;;  %v741_v63 = vpop.f32.mrf.mxu1 }
 0x13c   : > { %773 = vst [vmem:[#allocation2 + $0x18] sm:$0xff] %v707_v60  ;;  %781 = vst [vmem:[#allocation2 + $0x38] sm:$0xff] %v747_v61  ;;  %v702_v0 = vadd.f32 %v2281_v49, %v701_v62  ;;  %v742_v1 = vadd.f32 %v2281_v49, %v741_v63 }
 0x13d   : > { %v2572_v2 = vpop.f32.mrf.mxu0  ;;  %v2584_v3 = vpop.f32.mrf.mxu1 }
 0x13e   : > { %772 = vst [vmem:[#allocation2 + $0x58] sm:$0xff] %v702_v0  ;;  %780 = vst [vmem:[#allocation2 + $0x10] sm:$0xff] %v742_v1  ;;  %v717_v4 = vadd.f32 %v2572_v2, %v2281_v49  ;;  %v757_v5 = vadd.f32 %v2584_v3, %v2281_v49 }
 0x13f   : > { %v711_v6 = vpop.f32.mrf.mxu0  ;;  %v751_v7 = vpop.f32.mrf.mxu1 }
 0x140   : > { %775 = vst [vmem:[#allocation2 + $0x68] sm:$0xff] %v717_v4  ;;  %783 = vst [vmem:[#allocation2 + $0x70] sm:$0xff] %v757_v5  ;;  %v712_v8 = vadd.f32 %v2281_v49, %v711_v6  ;;  %v752_v9 = vadd.f32 %v2281_v49, %v751_v7 }
 0x141   : > { %v2575_v10 = vpop.f32.mrf.mxu0  ;;  %v2587_v11 = vpop.f32.mrf.mxu1 }
 0x142   : > { %774 = vst [vmem:[#allocation2 + $0x50] sm:$0xff] %v712_v8  ;;  %782 = vst [vmem:[#allocation2 + $0x60] sm:$0xff] %v752_v9  ;;  %v727_v12 = vadd.f32 %v2575_v10, %v2281_v49  ;;  %v767_v13 = vadd.f32 %v2587_v11, %v2281_v49 }
 0x143   : > { %v721_v14 = vpop.f32.mrf.mxu0  ;;  %v761_v15 = vpop.f32.mrf.mxu1 }
 0x144   : > { %777 = vst [vmem:[#allocation2 + $0x48] sm:$0xff] %v727_v12  ;;  %785 = vst [vmem:[#allocation2 + $0x28] sm:$0xff] %v767_v13  ;;  %v722_v16 = vadd.f32 %v2281_v49, %v721_v14  ;;  %v762_v17 = vadd.f32 %v2281_v49, %v761_v15 }
 0x146   : > { %776 = vst [vmem:[#allocation2 + $0x8] sm:$0xff] %v722_v16  ;;  %784 = vst [vmem:[#allocation2 + $0x78] sm:$0xff] %v762_v17 }
 0x147 PF: > { %v983_v18 = vld [vmem:[%s3125_s13 + $0x10] sm:$0xff]  ;;  %v981_v19 = vld [vmem:[%s3125_s13] sm:$0xff]  ;;  %v3018_v20 = vmov 0   ;;  %v984_v21 = vld [vmem:[%s3125_s13 + $0x18] sm:$0xff]  ;;  %p2347_p12 = scmp.ne.s32.totalorder %s2999_s17, 1 }
 0x148   : > { %2912 = vset.pattern.permute.xlu1 %v3018_v20  ;;  %2911 = vset.pattern.permute.xlu0 %v3018_v20  ;;  %v982_v22 = vld [vmem:[%s3125_s13 + $0x8] sm:$0xff]  ;;  %v833_v23 = vld [vmem:[%s3142_s1 + $0x78] sm:$0xff]  ;;  %v832_v24 = vld [vmem:[%s3142_s1 + $0x70] sm:$0xff] }
 0x149   : > { %1004 = vperm.xlu1 %2912, %v983_v18   ;;  %998 = vperm.xlu0 %2911, %v981_v19   ;;  %v986_v26 = vld [vmem:[%s3125_s13 + $0x28] sm:$0xff]  ;;  %v985_v27 = vld [vmem:[%s3125_s13 + $0x20] sm:$0xff]  ;;  %v1192_v31 = vld [vmem:[#allocation2 + $0x70] sm:$0xff] }
 0x14a   : > { %2588 = vmatprep.subr.mxu0 %v833_v23  ;;  %v1191_v30 = vld [vmem:[#allocation2 + $0x60] sm:$0xff]  ;;  %v831_v32 = vld [vmem:[%s3142_s1 + $0x68] sm:$0xff]  ;;  %v1189_v34 = vld [vmem:[#allocation2 + $0x10] sm:$0xff] }
 0x14b   : > { %v1194_v28 = vld [vmem:[#allocation2 + $0x28] sm:$0xff]  ;;  %2589 = vmatpush3.msra.mxu0 %v833_v23  ;;  %v1201_v33 = vpack.c.bf16 %v1192_v31, %v1191_v30  ;;  %v1190_v35 = vld [vmem:[#allocation2 + $0x38] sm:$0xff]  ;;  %v987_v37 = vld [vmem:[%s3125_s13 + $0x30] sm:$0xff] }
 0x14c   : > { %2590 = vmatprep.subr.mxu0 %v832_v24  ;;  %v988_v36 = vld [vmem:[%s3125_s13 + $0x38] sm:$0xff]  ;;  %v830_v38 = vld [vmem:[%s3142_s1 + $0x60] sm:$0xff]  ;;  %v1200_v39 = vpack.c.bf16 %v1190_v35, %v1189_v34  ;;  %v990_v43 = vld [vmem:[%s3125_s13 + $0x48] sm:$0xff] }
 0x14d   : > { %1007 = vperm.xlu1 %2912, %v984_v21   ;;  %1001 = vperm.xlu0 %2911, %v982_v22   ;;  %v1193_v25 = vld [vmem:[#allocation2 + $0x78] sm:$0xff]  ;;  %v1187_v41 = vld [vmem:[#allocation2 + $0x40] sm:$0xff]  ;;  %v828_v46 = vld [vmem:[%s3142_s1 + $0x50] sm:$0xff] }
 0x14e   : > { %v1202_v29 = vpack.c.bf16 %v1194_v28, %v1193_v25  ;;  %2591 = vmatpush3.msra.mxu0 %v832_v24  ;;  %v829_v40 = vld [vmem:[%s3142_s1 + $0x58] sm:$0xff]  ;;  %v1188_v42 = vld [vmem:[#allocation2 + $0x20] sm:$0xff]  ;;  %v1185_v48 = vld [vmem:[#allocation2 + $0x8] sm:$0xff] }
 0x14f   : > { %2592 = vmatprep.subr.mxu0 %v831_v32  ;;  %v989_v44 = vld [vmem:[%s3125_s13 + $0x40] sm:$0xff]  ;;  %v1199_v47 = vpack.c.bf16 %v1188_v42, %v1187_v41  ;;  %v1186_v49 = vld [vmem:[#allocation2 + $0x48] sm:$0xff]  ;;  %v992_v50 = vld [vmem:[%s3125_s13 + $0x58] sm:$0xff] }
 0x150   : > { %2644 = vmatprep.subr.bf16.mxu1 %v1202_v29  ;;  %2593 = vmatpush3.msra.mxu0 %v831_v32  ;;  %v802_v45 = vld [vmem:[%s3130_s16] sm:$0xff]  ;;  %v991_v51 = vld [vmem:[%s3125_s13 + $0x50] sm:$0xff]  ;;  %v827_v52 = vld [vmem:[%s3142_s1 + $0x48] sm:$0xff]  ;;  %v1198_v53 = vpack.c.bf16 %v1186_v49, %v1185_v48 }
 0x151   : > { %1013 = vperm.xlu1 %2912, %v986_v26   ;;  %1010 = vperm.xlu0 %2911, %v985_v27   ;;  %v826_v54 = vld [vmem:[%s3142_s1 + $0x40] sm:$0xff]  ;;  %v1183_v55 = vld [vmem:[#allocation2 + $0x50] sm:$0xff]  ;;  %v1184_v56 = vld [vmem:[#allocation2 + $0x68] sm:$0xff]  ;;  %v979_v27 = vlaneseq }
 0x152   : > { %2645 = vmatpush3.bf16.msra.mxu1 %v1202_v29  ;;  %2594 = vmatprep.subr.mxu0 %v830_v38  ;;  %v994_v57 = vld [vmem:[%s3125_s13 + $0x68] sm:$0xff]  ;;  %v993_v58 = vld [vmem:[%s3125_s13 + $0x60] sm:$0xff]  ;;  %v825_v59 = vld [vmem:[%s3142_s1 + $0x38] sm:$0xff]  ;;  %v1197_v60 = vpack.c.bf16 %v1184_v56, %v1183_v55 }
 0x153   : > { %2646 = vmatprep.subr.bf16.mxu1 %v1201_v33  ;;  %2595 = vmatpush3.msra.mxu0 %v830_v38  ;;  %v1181_v61 = vld [vmem:[#allocation2 + $0x58] sm:$0xff]  ;;  %v995_v0 = vld [vmem:[%s3125_s13 + $0x70] sm:$0xff]  ;;  %v823_v3 = vld [vmem:[%s3142_s1 + $0x28] sm:$0xff]  ;;  %v980_v30 = vand.u32 127, %v979_v27 }
 0x154   : > { %2596 = vmatprep.subr.mxu0 %v829_v40  ;;  %2620 = vmatprep.mubr.f32.mxu0 %v802_v45  ;;  %v1182_v62 = vld [vmem:[#allocation2 + $0x18] sm:$0xff]  ;;  %v824_v1 = vld [vmem:[%s3142_s1 + $0x30] sm:$0xff]  ;;  %v1180_v5 = vld [vmem:[#allocation2] sm:$0xff] }
 0x155   : > { %1019 = vperm.xlu1 %2912, %v988_v36   ;;  %1016 = vperm.xlu0 %2911, %v987_v37   ;;  %v996_v63 = vld [vmem:[%s3125_s13 + $0x78] sm:$0xff]  ;;  %v1196_v2 = vpack.c.bf16 %v1182_v62, %v1181_v61  ;;  %v1179_v4 = vld [vmem:[#allocation2 + $0x30] sm:$0xff]  ;;  %v822_v6 = vld [vmem:[%s3142_s1 + $0x20] sm:$0xff] }
 0x156   : > { %2647 = vmatpush3.bf16.msra.mxu1 %v1201_v33  ;;  %2597 = vmatpush3.msra.mxu0 %v829_v40  ;;  %v1195_v7 = vpack.c.bf16 %v1180_v5, %v1179_v4  ;;  %v821_v8 = vld [vmem:[%s3142_s1 + $0x18] sm:$0xff]  ;;  %v820_v9 = vld [vmem:[%s3142_s1 + $0x10] sm:$0xff]  ;;  %v819_v10 = vld [vmem:[%s3142_s1 + $0x8] sm:$0xff]  ;;  %v3019_v33 = vmov 1.0|1.0  }
 0x157   : > { %2648 = vmatprep.subr.bf16.mxu1 %v1200_v39  ;;  %2598 = vmatprep.subr.mxu0 %v828_v46  ;;  %v818_v11 = vld [vmem:[%s3142_s1] sm:$0xff]  ;;  %v803_v12 = vld [vmem:[%s3130_s16 + $0x8] sm:$0xff]  ;;  %v804_v13 = vld [vmem:[%s3130_s16 + $0x10] sm:$0xff] }
 0x158   : > { %2599 = vmatpush3.msra.mxu0 %v828_v46  ;;  %v805_v14 = vld [vmem:[%s3130_s16 + $0x18] sm:$0xff]  ;;  %v806_v15 = vld [vmem:[%s3130_s16 + $0x20] sm:$0xff]  ;;  %v807_v16 = vld [vmem:[%s3130_s16 + $0x28] sm:$0xff]  ;;  %v1102_v46 = vshrl.u32 %v979_v27, 7 }
 0x159   : > { %1025 = vperm.xlu1 %2912, %v990_v43   ;;  %1022 = vperm.xlu0 %2911, %v989_v44   ;;  %v808_v17 = vld [vmem:[%s3130_s16 + $0x30] sm:$0xff]  ;;  %v809_v18 = vld [vmem:[%s3130_s16 + $0x38] sm:$0xff]  ;;  %v810_v19 = vld [vmem:[%s3130_s16 + $0x40] sm:$0xff] }
 0x15a   : > { %2649 = vmatpush3.bf16.msra.mxu1 %v1200_v39  ;;  %2600 = vmatprep.subr.mxu0 %v827_v52  ;;  %v811_v20 = vld [vmem:[%s3130_s16 + $0x48] sm:$0xff]  ;;  %v812_v21 = vld [vmem:[%s3130_s16 + $0x50] sm:$0xff]  ;;  %v813_v22 = vld [vmem:[%s3130_s16 + $0x58] sm:$0xff]  ;;  %v1110_v48 = vadd.s32 64, %v1102_v46  ;;  %v1111_v49 = vadd.s32 72, %v1102_v46  ;;  %v1106_v56 = vadd.s32 32, %v1102_v46 }
 0x15b   : > { %2650 = vmatprep.subr.bf16.mxu1 %v1199_v47  ;;  %2601 = vmatpush3.msra.mxu0 %v827_v52  ;;  %v814_v23 = vld [vmem:[%s3130_s16 + $0x60] sm:$0xff]  ;;  %v815_v24 = vld [vmem:[%s3130_s16 + $0x68] sm:$0xff]  ;;  %v816_v25 = vld [vmem:[%s3130_s16 + $0x70] sm:$0xff]  ;;  %v1105_v52 = vadd.s32 24, %v1102_v46  ;;  %v1108_v61 = vadd.s32 48, %v1102_v46  ;;  %v1109_v62 = vadd.s32 56, %v1102_v46 }
 0x15c   : > { %2602 = vmatprep.subr.mxu0 %v826_v54  ;;  %v817_v26 = vld [vmem:[%s3130_s16 + $0x78] sm:$0xff]  ;;  %s3906_s16 = scalar_lea.vmem %s3881_s2, %s3115_s25  ;;  %v1326_v55 = vld [vmem:[#allocation3 + $0x10] sm:$0xff]  ;;  %v1325_v4 = vld [vmem:[#allocation3 + $0x68] sm:$0xff] }
 0x15d   : > { %1031 = vperm.xlu1 %2912, %v992_v50   ;;  %1028 = vperm.xlu0 %2911, %v991_v51   ;;  %v2298_v50 = vld [vmem:[%s3906_s16] ss:$0 sm:$0xff]  ;;  %v1104_v51 = vadd.s32 16, %v1102_v46 }
 0x15e   : > { %2651 = vmatpush3.bf16.msra.mxu1 %v1199_v47  ;;  %2603 = vmatpush3.msra.mxu0 %v826_v54  ;;  %v1103_v47 = vadd.s32 8, %v1102_v46  ;;  %v1113_v54 = vadd.s32 88, %v1102_v46 }
 0x15f   : > { %2652 = vmatprep.subr.bf16.mxu1 %v1198_v53  ;;  %2604 = vmatprep.subr.mxu0 %v825_v59 }
 0x160   : > { %2605 = vmatpush3.msra.mxu0 %v825_v59  ;;  %v1114_v59 = vadd.s32 96, %v1102_v46 }
 0x161   : > { %1037 = vperm.xlu1 %2912, %v994_v57   ;;  %1034 = vperm.xlu0 %2911, %v993_v58   ;;  %v1107_v57 = vadd.s32 40, %v1102_v46 }
 0x162   : > { %2653 = vmatpush3.bf16.msra.mxu1 %v1198_v53  ;;  %2606 = vmatprep.subr.mxu0 %v824_v1  ;;  %v1112_v53 = vadd.s32 80, %v1102_v46 }
 0x163   : > { %2654 = vmatprep.subr.bf16.mxu1 %v1197_v60  ;;  %2607 = vmatpush3.msra.mxu0 %v824_v1  ;;  %v1116_v1 = vadd.s32 112, %v1102_v46 }
 0x164   : > { %2608 = vmatprep.subr.mxu0 %v823_v3 }
 0x165   : > { %1043 = vperm.xlu1 %2912, %v996_v63   ;;  %1040 = vperm.xlu0 %2911, %v995_v0   ;;  %v1327_v0 = vld [vmem:[#allocation3 + $0x40] sm:$0xff] }
 0x166   : > { %2655 = vmatpush3.bf16.msra.mxu1 %v1197_v60  ;;  %2609 = vmatpush3.msra.mxu0 %v823_v3  ;;  %v1115_v60 = vadd.s32 104, %v1102_v46 }
 0x167   : > { %2656 = vmatprep.subr.bf16.mxu1 %v1196_v2  ;;  %2610 = vmatprep.subr.mxu0 %v822_v6 }
 0x168   : > { %2611 = vmatpush3.msra.mxu0 %v822_v6 }
 0x169   : > { %2612 = vmatprep.subr.mxu0 %v821_v8 }
 0x16a   : > { %2657 = vmatpush3.bf16.msra.mxu1 %v1196_v2  ;;  %2613 = vmatpush3.msra.mxu0 %v821_v8  ;;  %v1117_v2 = vadd.s32 120, %v1102_v46 }
 0x16b   : > { %2658 = vmatprep.subr.bf16.mxu1 %v1195_v7  ;;  %2614 = vmatprep.subr.mxu0 %v820_v9 }
 0x16c   : > { %2615 = vmatpush3.msra.mxu0 %v820_v9 }
 0x16d   : > { %2616 = vmatprep.subr.mxu0 %v819_v10 }
 0x16e   : > { %2659 = vmatpush3.bf16.msra.mxu1 %v1195_v7  ;;  %2617 = vmatpush3.msra.mxu0 %v819_v10 }
 0x16f   : > { %2618 = vmatprep.subr.mxu0 %v818_v11 }
 0x170   : > { %2619 = vmatpush3.msra.mxu0 %v818_v11 }
 0x171   : > { %2621 = vmatmul.mubr.f32.vlgmr.msra.gmra.mxu0 %v803_v12 }
 0x172   : > { %2623 = vmatprep.mubr.f32.mxu0 %v804_v13 }
 0x175   : > { %2624 = vmatmul.mubr.f32.gmra.mxu0 %v805_v14 }
 0x176   : > { %2626 = vmatprep.mubr.f32.mxu0 %v806_v15 }
 0x179   : > { %2627 = vmatmul.mubr.f32.gmra.mxu0 %v807_v16 }
 0x17a   : > { %2629 = vmatprep.mubr.f32.mxu0 %v808_v17 }
 0x17d   : > { %2630 = vmatmul.mubr.f32.gmra.mxu0 %v809_v18 }
 0x17e   : > { %2632 = vmatprep.mubr.f32.mxu0 %v810_v19 }
 0x181   : > { %2633 = vmatmul.mubr.f32.gmra.mxu0 %v811_v20 }
 0x182   : > { %2635 = vmatprep.mubr.f32.mxu0 %v812_v21 }
 0x185   : > { %2636 = vmatmul.mubr.f32.gmra.mxu0 %v813_v22 }
 0x186   : > { %2638 = vmatprep.mubr.f32.mxu0 %v814_v23 }
 0x189   : > { %2639 = vmatmul.mubr.f32.gmra.mxu0 %v815_v24 }
 0x18a   : > { %2641 = vmatprep.mubr.f32.mxu0 %v816_v25 }
 0x18d   : > { %2642 = vmatmul.mubr.f32.gmra.mxu0 %v817_v26 }
 0x1c4   : > { %v1005_v28 = vpop.permute.xlu1 %1004  ;;  %v999_v29 = vpop.permute.xlu0 %998 }
 0x1c5   : > { %vm1047_vm0 = vcmp.eq.s32.totalorder %v980_v30, %v1005_v28  ;;  %vm1045_vm3 = vcmp.eq.s32.totalorder %v980_v30, %v999_v29 }
 0x1c8   : > { %v1008_v31 = vpop.permute.xlu1 %1007  ;;  %v1002_v32 = vpop.permute.xlu0 %1001 }
 0x1c9   : > { %vm1048_vm1 = vcmp.eq.s32.totalorder %v980_v30, %v1008_v31  ;;  %vm1046_vm2 = vcmp.eq.s32.totalorder %v980_v30, %v1002_v32 }
 0x1ca   : > { %vm2317_vm4 = vmpackc.low %vm1048_vm1, %vm1047_vm0 }
 0x1cb   : > { %vm2315_vm5 = vmpackc.low %vm1046_vm2, %vm1045_vm3 }
 0x1cc   : > { %2660 = vmatprep.mubr.msk.bf16.mxu1 %vm2315_vm5, %v3019_v33  ;;  %v1014_v34 = vpop.permute.xlu1 %1013  ;;  %v1011_v35 = vpop.permute.xlu0 %1010 }
 0x1cd   : > { %vm1050_vm6 = vcmp.eq.s32.totalorder %v980_v30, %v1014_v34  ;;  %vm1049_vm7 = vcmp.eq.s32.totalorder %v980_v30, %v1011_v35  ;;  %2661 = vmatmul.mubr.msk.bf16.vlgmr.msra.gmra.mxu1 %vm2317_vm4, %v3019_v33 }
 0x1ce   : > { %vm2319_vm8 = vmpackc.low %vm1050_vm6, %vm1049_vm7 }
 0x1cf   : > { %2664 = vmatprep.mubr.msk.bf16.mxu1 %vm2319_vm8, %v3019_v33  ;;  %vm1123_vm8 = vcmp.eq.s32.totalorder %v1102_v46, %v2298_v50 }
 0x1d0   : > { %v1020_v36 = vpop.permute.xlu1 %1019  ;;  %v1017_v37 = vpop.permute.xlu0 %1016 }
 0x1d1   : > { %vm1052_vm9 = vcmp.eq.s32.totalorder %v980_v30, %v1020_v36  ;;  %vm1051_vm10 = vcmp.eq.s32.totalorder %v980_v30, %v1017_v37 }
 0x1d2   : > { %vm2321_vm11 = vmpackc.low %vm1052_vm9, %vm1051_vm10  ;;  %vm1124_vm9 = vcmp.eq.s32.totalorder %v1103_v47, %v2298_v50  ;;  %vm1131_vm10 = vcmp.eq.s32.totalorder %v1110_v48, %v2298_v50 }
 0x1d4   : > { %v1026_v38 = vpop.permute.xlu1 %1025  ;;  %v1023_v39 = vpop.permute.xlu0 %1022 }
 0x1d5   : > { %vm1054_vm12 = vcmp.eq.s32.totalorder %v980_v30, %v1026_v38  ;;  %vm1053_vm13 = vcmp.eq.s32.totalorder %v980_v30, %v1023_v39  ;;  %2665 = vmatmul.mubr.msk.bf16.gmra.mxu1 %vm2321_vm11, %v3019_v33  ;;  %vm1132_vm11 = vcmp.eq.s32.totalorder %v1111_v49, %v2298_v50 }
 0x1d6   : > { %vm2323_vm14 = vmpackc.low %vm1054_vm12, %vm1053_vm13  ;;  %vm1125_vm13 = vcmp.eq.s32.totalorder %v1104_v51, %v2298_v50 }
 0x1d7   : > { %2668 = vmatprep.mubr.msk.bf16.mxu1 %vm2323_vm14, %v3019_v33  ;;  %vm2331_vm12 = vmpackc.low %vm1124_vm9, %vm1123_vm8  ;;  %vm1126_vm14 = vcmp.eq.s32.totalorder %v1105_v52, %v2298_v50  ;;  %vm1136_vm8 = vcmp.eq.s32.totalorder %v1115_v60, %v2298_v50  ;;  %vm1129_vm9 = vcmp.eq.s32.totalorder %v1108_v61, %v2298_v50 }
 0x1d8   : > { %v1032_v40 = vpop.permute.xlu1 %1031  ;;  %v1029_v41 = vpop.permute.xlu0 %1028  ;;  %2692 = vmatprep.mubr.msk.bf16.mxu0 %vm2331_vm12, %v3019_v33 }
 0x1d9   : > { %vm1056_vm15 = vcmp.eq.s32.totalorder %v980_v30, %v1032_v40  ;;  %vm1055_vm0 = vcmp.eq.s32.totalorder %v980_v30, %v1029_v41 }
 0x1da   : > { %vm2325_vm1 = vmpackc.low %vm1056_vm15, %vm1055_vm0  ;;  %vm1133_vm15 = vcmp.eq.s32.totalorder %v1112_v53, %v2298_v50  ;;  %vm1134_vm0 = vcmp.eq.s32.totalorder %v1113_v54, %v2298_v50 }
 0x1dc   : > { %v1038_v42 = vpop.permute.xlu1 %1037  ;;  %v1035_v43 = vpop.permute.xlu0 %1034 }
 0x1dd   : > { %vm1058_vm2 = vcmp.eq.s32.totalorder %v980_v30, %v1038_v42  ;;  %vm1057_vm3 = vcmp.eq.s32.totalorder %v980_v30, %v1035_v43  ;;  %2669 = vmatmul.mubr.msk.bf16.gmra.mxu1 %vm2325_vm1, %v3019_v33  ;;  %vm2339_vm1 = vmpackc.low %vm1132_vm11, %vm1131_vm10  ;;  %vm1130_vm10 = vcmp.eq.s32.totalorder %v1109_v62, %v2298_v50 }
 0x1de   : > { %vm2327_vm4 = vmpackc.low %vm1058_vm2, %vm1057_vm3 }
 0x1df   : > { %2672 = vmatprep.mubr.msk.bf16.mxu1 %vm2327_vm4, %v3019_v33  ;;  %vm3396_vm2 = vmpackc.low %vm1126_vm14, %vm1125_vm13  ;;  %vm1127_vm4 = vcmp.eq.s32.totalorder %v1106_v56, %v2298_v50  ;;  %vm1137_vm13 = vcmp.eq.s32.totalorder %v1116_v1, %v2298_v50  ;;  %vm1138_vm14 = vcmp.eq.s32.totalorder %v1117_v2, %v2298_v50  ;;  %v1334_v2 = vld [vmem:[#allocation3 + $0x18] sm:$0xff] }
 0x1e0   : > { %v1044_v44 = vpop.permute.xlu1 %1043  ;;  %v1041_v45 = vpop.permute.xlu0 %1040  ;;  %vm3400_vm3 = vmpackc.low %vm1134_vm0, %vm1133_vm15 }
 0x1e1   : > { %vm1060_vm5 = vcmp.eq.s32.totalorder %v980_v30, %v1044_v44  ;;  %vm1059_vm6 = vcmp.eq.s32.totalorder %v980_v30, %v1041_v45  ;;  %vm3412_vm12 = vmpackc.low %vm1130_vm10, %vm1129_vm9 }
 0x1e2   : > { %vm2329_vm7 = vmpackc.low %vm1060_vm5, %vm1059_vm6  ;;  %vm1128_vm5 = vcmp.eq.s32.totalorder %v1107_v57, %v2298_v50 }
 0x1e3   : > { %vm3404_vm6 = vmpackc.low %vm1128_vm5, %vm1127_vm4 }
 0x1e4   : > { %vm3416_vm15 = vmpackc.low %vm1138_vm14, %vm1137_vm13 }
 0x1e5   : > { %2673 = vmatmul.mubr.msk.bf16.gmra.mxu1 %vm2329_vm7, %v3019_v33  ;;  %vm1135_vm7 = vcmp.eq.s32.totalorder %v1114_v59, %v2298_v50 }
 0x1e6   : > { %2700 = vmatprep.mubr.msk.bf16.mxu1 %vm2339_vm1, %v3019_v33  ;;  %vm3408_vm11 = vmpackc.low %vm1136_vm8, %vm1135_vm7 }
 0x231   : > { %v3420_v5 = vpop.f32.mrf.mxu0 }
 0x233   : > { %v3422_v6 = vpop.f32.mrf.mxu0 }
 0x235   : > { %v3424_v7 = vpop.f32.mrf.mxu0 }
 0x237   : > { %v3426_v8 = vpop.f32.mrf.mxu0 }
 0x239   : > { %v2628_v9 = vpop.f32.mrf.mxu0 }
 0x23b   : > { %v920_v10 = vpop.f32.mrf.mxu0 }
 0x23d   : > { %v2631_v11 = vpop.f32.mrf.mxu0 }
 0x23f   : > { %v930_v12 = vpop.f32.mrf.mxu0 }
 0x241   : > { %v2634_v13 = vpop.f32.mrf.mxu0 }
 0x243   : > { %v940_v16 = vpop.f32.mrf.mxu0 }
 0x245   : > { %v2637_v19 = vpop.f32.mrf.mxu0 }
 0x247   : > { %v950_v22 = vpop.f32.mrf.mxu0 }
 0x249   : > { %v2640_v25 = vpop.f32.mrf.mxu0 }
 0x24b   : > { %v960_v28 = vpop.f32.mrf.mxu0 }
 0x24d   : > { %v2643_v30 = vpop.f32.mrf.mxu0 }
 0x24f   : > { %v970_v34 = vpop.f32.mrf.mxu0 }
 0x28d   : > { %v2662_v14 = vpop.f32.mrf.mxu1 }
 0x28e   : > { %v1302_v59 = vmul.f32 %v2662_v14, %v3426_v8 }
 0x28f   : > { %v3428_v15 = vpop.f32.mrf.mxu1 }
 0x290   : > { %v1300_v62 = vmul.f32 %v3428_v15, %v3422_v6  ;;  %v1324_v6 = vld [vmem:[#allocation3 + $0x28] sm:$0xff] }
 0x291   : > { %v2663_v17 = vpop.f32.mrf.mxu1 }
 0x292   : > { %v1303_v56 = vmul.f32 %v2663_v17, %v3424_v7  ;;  %v1332_v7 = vld [vmem:[#allocation3 + $0x20] sm:$0xff] }
 0x293   : > { %v1240_v18 = vpop.f32.mrf.mxu1 }
 0x294   : > { %v1317_v60 = vpack.c.bf16 %v1303_v56, %v1302_v59  ;;  %v1301_v61 = vmul.f32 %v3420_v5, %v1240_v18 }
 0x295   : > { %v2666_v20 = vpop.f32.mrf.mxu1 }
 0x296   : > { %v1306_v51 = vmul.f32 %v2666_v20, %v930_v12  ;;  %v1316_v1 = vpack.c.bf16 %v1301_v61, %v1300_v62  ;;  %v1338_v20 = vld [vmem:[#allocation3 + $0x60] sm:$0xff] }
 0x297   : > { %v1253_v21 = vpop.f32.mrf.mxu1 }
 0x298   : > { %v1304_v54 = vmul.f32 %v1253_v21, %v920_v10 }
 0x299   : > { %v2667_v23 = vpop.f32.mrf.mxu1 }
 0x29a   : > { %v1307_v49 = vmul.f32 %v2667_v23, %v2631_v11  ;;  %v1335_v11 = vld [vmem:[#allocation3 + $0x58] sm:$0xff] }
 0x29b   : > { %v1256_v24 = vpop.f32.mrf.mxu1 }
 0x29c   : > { %v1319_v52 = vpack.c.bf16 %v1307_v49, %v1306_v51  ;;  %v1305_v53 = vmul.f32 %v2628_v9, %v1256_v24 }
 0x29d   : > { %v2670_v26 = vpop.f32.mrf.mxu1 }
 0x29e   : > { %v1310_v45 = vmul.f32 %v2670_v26, %v950_v22  ;;  %v1318_v57 = vpack.c.bf16 %v1305_v53, %v1304_v54  ;;  %v1336_v26 = vld [vmem:[#allocation3] sm:$0xff] }
 0x29f   : > { %v1269_v27 = vpop.f32.mrf.mxu1 }
 0x2a0   : > { %v1308_v48 = vmul.f32 %v1269_v27, %v940_v16 }
 0x2a1   : > { %v2671_v29 = vpop.f32.mrf.mxu1 }
 0x2a2   : > { %v1311_v43 = vmul.f32 %v2671_v29, %v2637_v19  ;;  %v1330_v19 = vld [vmem:[#allocation3 + $0x70] sm:$0xff] }
 0x2a3   : > { %v1272_v31 = vpop.f32.mrf.mxu1 }
 0x2a4   : > { %v1321_v46 = vpack.c.bf16 %v1311_v43, %v1310_v45  ;;  %v1309_v47 = vmul.f32 %v2634_v13, %v1272_v31  ;;  %v1331_v31 = vld [vmem:[#allocation3 + $0x38] sm:$0xff] }
 0x2a5   : > { %v2674_v32 = vpop.f32.mrf.mxu1 }
 0x2a6   : > { %v1314_v37 = vmul.f32 %v2674_v32, %v970_v34  ;;  %v1320_v50 = vpack.c.bf16 %v1309_v47, %v1308_v48  ;;  %v1339_v32 = vld [vmem:[#allocation3 + $0x50] sm:$0xff] }
 0x2a7   : > { %v1285_v35 = vpop.f32.mrf.mxu1 }
 0x2a8   : > { %v1312_v40 = vmul.f32 %v1285_v35, %v960_v28 }
 0x2a9   : > { %v2675_v36 = vpop.f32.mrf.mxu1 }
 0x2aa   : > { %v1315_v38 = vmul.f32 %v2675_v36, %v2643_v30 }
 0x2ab   : > { %v1288_v39 = vpop.f32.mrf.mxu1 }
 0x2ac   : > { %v1323_v41 = vpack.c.bf16 %v1315_v38, %v1314_v37  ;;  %v1313_v42 = vmul.f32 %v2640_v25, %v1288_v39  ;;  %v1328_v25 = vld [vmem:[#allocation3 + $0x48] sm:$0xff]  ;;  %v1329_v38 = vld [vmem:[#allocation3 + $0x30] sm:$0xff] }
 0x2ad   : > { %v1337_v39 = vld [vmem:[#allocation3 + $0x8] sm:$0xff] }
 0x2ae   : > { %v1322_v44 = vpack.c.bf16 %v1313_v42, %v1312_v40  ;;  %2676 = vmatprep.subr.bf16.mxu0 %v1323_v41  ;;  %2852 = vmatprep.subr.bf16.mxu1 %v1323_v41 }
 0x2af   : > { %2677 = vmatpush3.bf16.msra.mxu0 %v1323_v41  ;;  %2860 = vmatpush3.bf16.msra.mxu1 %v1323_v41 }
 0x2b0   : > { %2678 = vmatprep.subr.bf16.mxu0 %v1322_v44  ;;  %2853 = vmatprep.subr.bf16.mxu1 %v1322_v44 }
 0x2b3   : > { %2679 = vmatpush3.bf16.msra.mxu0 %v1322_v44  ;;  %2861 = vmatpush3.bf16.msra.mxu1 %v1322_v44 }
 0x2b4   : > { %2680 = vmatprep.subr.bf16.mxu0 %v1321_v46  ;;  %2854 = vmatprep.subr.bf16.mxu1 %v1321_v46 }
 0x2b7   : > { %2681 = vmatpush3.bf16.msra.mxu0 %v1321_v46  ;;  %2862 = vmatpush3.bf16.msra.mxu1 %v1321_v46 }
 0x2b8   : > { %2682 = vmatprep.subr.bf16.mxu0 %v1320_v50  ;;  %2855 = vmatprep.subr.bf16.mxu1 %v1320_v50 }
 0x2bb   : > { %2683 = vmatpush3.bf16.msra.mxu0 %v1320_v50  ;;  %2863 = vmatpush3.bf16.msra.mxu1 %v1320_v50 }
 0x2bc   : > { %2684 = vmatprep.subr.bf16.mxu0 %v1319_v52  ;;  %2856 = vmatprep.subr.bf16.mxu1 %v1319_v52 }
 0x2bf   : > { %2685 = vmatpush3.bf16.msra.mxu0 %v1319_v52  ;;  %2864 = vmatpush3.bf16.msra.mxu1 %v1319_v52 }
 0x2c0   : > { %2686 = vmatprep.subr.bf16.mxu0 %v1318_v57  ;;  %2857 = vmatprep.subr.bf16.mxu1 %v1318_v57 }
 0x2c3   : > { %2687 = vmatpush3.bf16.msra.mxu0 %v1318_v57  ;;  %2865 = vmatpush3.bf16.msra.mxu1 %v1318_v57 }
 0x2c4   : > { %2688 = vmatprep.subr.bf16.mxu0 %v1317_v60  ;;  %2858 = vmatprep.subr.bf16.mxu1 %v1317_v60 }
 0x2c7   : > { %2689 = vmatpush3.bf16.msra.mxu0 %v1317_v60  ;;  %2866 = vmatpush3.bf16.msra.mxu1 %v1317_v60 }
 0x2c8   : > { %2690 = vmatprep.subr.bf16.mxu0 %v1316_v1  ;;  %2859 = vmatprep.subr.bf16.mxu1 %v1316_v1 }
 0x2cb   : > { %2691 = vmatpush3.bf16.msra.mxu0 %v1316_v1  ;;  %2867 = vmatpush3.bf16.msra.mxu1 %v1316_v1 }
 0x2ce   : > { %2693 = vmatmul.mubr.msk.bf16.vlgmr.msra.gmra.mxu0 %vm3396_vm2, %v3019_v33  ;;  %2701 = vmatmul.mubr.msk.bf16.vlgmr.msra.gmra.mxu1 %vm3400_vm3, %v3019_v33 }
 0x2cf   : > { %2696 = vmatprep.mubr.msk.bf16.mxu0 %vm3404_vm6, %v3019_v33  ;;  %2704 = vmatprep.mubr.msk.bf16.mxu1 %vm3408_vm11, %v3019_v33 }
 0x2d6   : > { %2697 = vmatmul.mubr.msk.bf16.gmra.mxu0 %vm3412_vm12, %v3019_v33  ;;  %2705 = vmatmul.mubr.msk.bf16.gmra.mxu1 %vm3416_vm15, %v3019_v33  ;;  %v1333_v33 = vld [vmem:[#allocation3 + $0x78] sm:$0xff] }
 0x38e   : > { %v2694_v58 = vpop.f32.mrf.mxu0  ;;  %v2702_v5 = vpop.f32.mrf.mxu1 }
 0x38f   : > { %v1439_v63 = vadd.f32 %v2694_v58, %v1326_v55  ;;  %v1447_v8 = vadd.f32 %v2702_v5, %v1334_v2 }
 0x390   : > { %v1374_v9 = vpop.f32.mrf.mxu0  ;;  %v1406_v10 = vpop.f32.mrf.mxu1 }
 0x391   : > { %1455 = vst [vmem:[#allocation3 + $0x10] sm:$0xff] %v1439_v63  ;;  %1463 = vst [vmem:[#allocation3 + $0x18] sm:$0xff] %v1447_v8  ;;  %v1437_v3 = vadd.f32 %v1374_v9, %v1324_v6  ;;  %v1445_v12 = vadd.f32 %v1406_v10, %v1332_v7 }
 0x392   : > { %v2695_v13 = vpop.f32.mrf.mxu0  ;;  %v2703_v14 = vpop.f32.mrf.mxu1 }
 0x393   : > { %1453 = vst [vmem:[#allocation3 + $0x28] sm:$0xff] %v1437_v3  ;;  %1461 = vst [vmem:[#allocation3 + $0x20] sm:$0xff] %v1445_v12  ;;  %v1440_v15 = vadd.f32 %v2695_v13, %v1327_v0  ;;  %v1448_v16 = vadd.f32 %v2703_v14, %v1335_v11 }
 0x394   : > { %v1377_v17 = vpop.f32.mrf.mxu0  ;;  %v1409_v18 = vpop.f32.mrf.mxu1 }
 0x395   : > { %1456 = vst [vmem:[#allocation3 + $0x40] sm:$0xff] %v1440_v15  ;;  %1464 = vst [vmem:[#allocation3 + $0x58] sm:$0xff] %v1448_v16  ;;  %v1438_v21 = vadd.f32 %v1377_v17, %v1325_v4  ;;  %v1446_v22 = vadd.f32 %v1409_v18, %v1333_v33 }
 0x396   : > { %v2698_v23 = vpop.f32.mrf.mxu0  ;;  %v2706_v24 = vpop.f32.mrf.mxu1 }
 0x397   : > { %1454 = vst [vmem:[#allocation3 + $0x68] sm:$0xff] %v1438_v21  ;;  %1462 = vst [vmem:[#allocation3 + $0x78] sm:$0xff] %v1446_v22  ;;  %v1443_v27 = vadd.f32 %v2698_v23, %v1330_v19  ;;  %v1451_v28 = vadd.f32 %v2706_v24, %v1338_v20 }
 0x398   : > { %v1390_v29 = vpop.f32.mrf.mxu0  ;;  %v1422_v30 = vpop.f32.mrf.mxu1 }
 0x399   : > { %1459 = vst [vmem:[#allocation3 + $0x70] sm:$0xff] %v1443_v27  ;;  %1467 = vst [vmem:[#allocation3 + $0x60] sm:$0xff] %v1451_v28  ;;  %v1441_v34 = vadd.f32 %v1390_v29, %v1328_v25  ;;  %v1449_v35 = vadd.f32 %v1422_v30, %v1336_v26 }
 0x39a   : > { %v2699_v36 = vpop.f32.mrf.mxu0  ;;  %v2707_v37 = vpop.f32.mrf.mxu1 }
 0x39b   : > { %1457 = vst [vmem:[#allocation3 + $0x48] sm:$0xff] %v1441_v34  ;;  %1465 = vst [vmem:[#allocation3] sm:$0xff] %v1449_v35  ;;  %v1444_v40 = vadd.f32 %v2699_v36, %v1331_v31  ;;  %v1452_v41 = vadd.f32 %v2707_v37, %v1339_v32  ;;  %1472 = sbr.rel (%p2347_p12) target bundleno = 1441 (0x5a1), region = 76 }
 0x39c   : > { %v1393_v42 = vpop.f32.mrf.mxu0  ;;  %v1425_v43 = vpop.f32.mrf.mxu1 }
 0x39d   : > { %1460 = vst [vmem:[#allocation3 + $0x38] sm:$0xff] %v1444_v40  ;;  %1468 = vst [vmem:[#allocation3 + $0x50] sm:$0xff] %v1452_v41  ;;  %v1442_v44 = vadd.f32 %v1393_v42, %v1329_v38  ;;  %v1450_v45 = vadd.f32 %v1425_v43, %v1337_v39 }
 0x39f   : > { %1458 = vst [vmem:[#allocation3 + $0x30] sm:$0xff] %v1442_v44  ;;  %1466 = vst [vmem:[#allocation3 + $0x8] sm:$0xff] %v1450_v45 }
 0x3a0   : > { %v1504_v46 = vld [vmem:[%s3152_s22 + $0x78] sm:$0xff]  ;;  %v1503_v47 = vld [vmem:[%s3152_s22 + $0x70] sm:$0xff]  ;;  %v1502_v48 = vld [vmem:[%s3152_s22 + $0x68] sm:$0xff] }
 0x3a1   : > { %2708 = vmatprep.subr.mxu0 %v1504_v46  ;;  %v1501_v49 = vld [vmem:[%s3152_s22 + $0x60] sm:$0xff]  ;;  %v1473_v50 = vld [vmem:[#allocation3 + $0x28] sm:$0xff]  ;;  %v1500_v51 = vld [vmem:[%s3152_s22 + $0x58] sm:$0xff] }
 0x3a2   : > { %2709 = vmatpush3.msra.mxu0 %v1504_v46  ;;  %2740 = vmatprep.mubr.f32.mxu0 %v1473_v50  ;;  %v1499_v52 = vld [vmem:[%s3152_s22 + $0x50] sm:$0xff]  ;;  %v1498_v53 = vld [vmem:[%s3152_s22 + $0x48] sm:$0xff]  ;;  %v1497_v54 = vld [vmem:[%s3152_s22 + $0x40] sm:$0xff] }
 0x3a3   : > { %2710 = vmatprep.subr.mxu0 %v1503_v47  ;;  %v1496_v56 = vld [vmem:[%s3152_s22 + $0x38] sm:$0xff]  ;;  %v1495_v57 = vld [vmem:[%s3152_s22 + $0x30] sm:$0xff]  ;;  %v1494_v59 = vld [vmem:[%s3152_s22 + $0x28] sm:$0xff] }
 0x3a4   : > { %2711 = vmatpush3.msra.mxu0 %v1503_v47  ;;  %v1493_v60 = vld [vmem:[%s3152_s22 + $0x20] sm:$0xff]  ;;  %v1492_v61 = vld [vmem:[%s3152_s22 + $0x18] sm:$0xff]  ;;  %v1491_v62 = vld [vmem:[%s3152_s22 + $0x10] sm:$0xff] }
 0x3a5   : > { %2712 = vmatprep.subr.mxu0 %v1502_v48  ;;  %v1490_v1 = vld [vmem:[%s3152_s22 + $0x8] sm:$0xff]  ;;  %v1489_v55 = vld [vmem:[%s3152_s22] sm:$0xff]  ;;  %v1475_v58 = vld [vmem:[#allocation3 + $0x10] sm:$0xff] }
 0x3a6   : > { %2713 = vmatpush3.msra.mxu0 %v1502_v48  ;;  %v1474_v2 = vld [vmem:[#allocation3 + $0x68] sm:$0xff]  ;;  %v1476_v5 = vld [vmem:[#allocation3 + $0x40] sm:$0xff]  ;;  %v1478_v7 = vld [vmem:[#allocation3 + $0x30] sm:$0xff] }
 0x3a7   : > { %2714 = vmatprep.subr.mxu0 %v1501_v49  ;;  %v1477_v6 = vld [vmem:[#allocation3 + $0x48] sm:$0xff]  ;;  %v1479_v63 = vld [vmem:[#allocation3 + $0x70] sm:$0xff]  ;;  %v1480_v8 = vld [vmem:[#allocation3 + $0x38] sm:$0xff] }
 0x3a8   : > { %2715 = vmatpush3.msra.mxu0 %v1501_v49  ;;  %v1481_v9 = vld [vmem:[#allocation3 + $0x20] sm:$0xff]  ;;  %v1482_v10 = vld [vmem:[#allocation3 + $0x78] sm:$0xff]  ;;  %v1486_v12 = vld [vmem:[#allocation3 + $0x8] sm:$0xff] }
 0x3a9   : > { %2716 = vmatprep.subr.mxu0 %v1500_v51  ;;  %v1483_v0 = vld [vmem:[#allocation3 + $0x18] sm:$0xff]  ;;  %v1485_v3 = vld [vmem:[#allocation3] sm:$0xff]  ;;  %v1488_v14 = vld [vmem:[#allocation3 + $0x50] sm:$0xff] }
 0x3aa   : > { %2717 = vmatpush3.msra.mxu0 %v1500_v51  ;;  %v1484_v11 = vld [vmem:[#allocation3 + $0x58] sm:$0xff]  ;;  %v1487_v13 = vld [vmem:[#allocation3 + $0x60] sm:$0xff]  ;;  %v1927_v33 = vld [vmem:[%s3161_s30 + $0x70] sm:$0xff] }
 0x3ab   : > { %2718 = vmatprep.subr.mxu0 %v1499_v52  ;;  %v1928_v4 = vld [vmem:[%s3161_s30 + $0x78] sm:$0xff]  ;;  %v1926_v15 = vld [vmem:[%s3161_s30 + $0x68] sm:$0xff]  ;;  %v1925_v16 = vld [vmem:[%s3161_s30 + $0x60] sm:$0xff] }
 0x3ac   : > { %2719 = vmatpush3.msra.mxu0 %v1499_v52  ;;  %2764 = vmatprep.subr.mxu1 %v1928_v4  ;;  %v1924_v17 = vld [vmem:[%s3161_s30 + $0x58] sm:$0xff]  ;;  %v1923_v18 = vld [vmem:[%s3161_s30 + $0x50] sm:$0xff]  ;;  %v1922_v19 = vld [vmem:[%s3161_s30 + $0x48] sm:$0xff] }
 0x3ad   : > { %2720 = vmatprep.subr.mxu0 %v1498_v53  ;;  %2765 = vmatpush3.msra.mxu1 %v1928_v4  ;;  %v1921_v20 = vld [vmem:[%s3161_s30 + $0x40] sm:$0xff]  ;;  %v1920_v21 = vld [vmem:[%s3161_s30 + $0x38] sm:$0xff]  ;;  %v1919_v22 = vld [vmem:[%s3161_s30 + $0x30] sm:$0xff] }
 0x3ae   : > { %2721 = vmatpush3.msra.mxu0 %v1498_v53  ;;  %2766 = vmatprep.subr.mxu1 %v1927_v33  ;;  %v1918_v23 = vld [vmem:[%s3161_s30 + $0x28] sm:$0xff]  ;;  %v1917_v24 = vld [vmem:[%s3161_s30 + $0x20] sm:$0xff]  ;;  %v1916_v25 = vld [vmem:[%s3161_s30 + $0x18] sm:$0xff] }
 0x3af   : > { %2722 = vmatprep.subr.mxu0 %v1497_v54  ;;  %2767 = vmatpush3.msra.mxu1 %v1927_v33  ;;  %v1915_v26 = vld [vmem:[%s3161_s30 + $0x10] sm:$0xff]  ;;  %v1914_v27 = vld [vmem:[%s3161_s30 + $0x8] sm:$0xff]  ;;  %v1913_v28 = vld [vmem:[%s3161_s30] sm:$0xff]  ;;  %s3937_s30 = scalar_lea.vmem %s3889_s10, %s3951_s18 }
 0x3b0   : > { %2723 = vmatpush3.msra.mxu0 %v1497_v54  ;;  %2768 = vmatprep.subr.mxu1 %v1926_v15  ;;  %v3491_v29 = vld [vmem:[%s535_s24] ss:$0 sm:$0xff] }
 0x3b1   : > { %2724 = vmatprep.subr.mxu0 %v1496_v56  ;;  %2769 = vmatpush3.msra.mxu1 %v1926_v15 }
 0x3b2   : > { %2725 = vmatpush3.msra.mxu0 %v1496_v56  ;;  %2770 = vmatprep.subr.mxu1 %v1925_v16 }
 0x3b3   : > { %2726 = vmatprep.subr.mxu0 %v1495_v57  ;;  %2771 = vmatpush3.msra.mxu1 %v1925_v16 }
 0x3b4   : > { %2727 = vmatpush3.msra.mxu0 %v1495_v57  ;;  %2772 = vmatprep.subr.mxu1 %v1924_v17 }
 0x3b5   : > { %2728 = vmatprep.subr.mxu0 %v1494_v59  ;;  %2773 = vmatpush3.msra.mxu1 %v1924_v17 }
 0x3b6   : > { %2729 = vmatpush3.msra.mxu0 %v1494_v59  ;;  %2774 = vmatprep.subr.mxu1 %v1923_v18 }
 0x3b7   : > { %2730 = vmatprep.subr.mxu0 %v1493_v60  ;;  %2775 = vmatpush3.msra.mxu1 %v1923_v18 }
 0x3b8   : > { %2731 = vmatpush3.msra.mxu0 %v1493_v60  ;;  %2776 = vmatprep.subr.mxu1 %v1922_v19 }
 0x3b9   : > { %2732 = vmatprep.subr.mxu0 %v1492_v61  ;;  %2777 = vmatpush3.msra.mxu1 %v1922_v19 }
 0x3ba   : > { %2733 = vmatpush3.msra.mxu0 %v1492_v61  ;;  %2778 = vmatprep.subr.mxu1 %v1921_v20 }
 0x3bb   : > { %2734 = vmatprep.subr.mxu0 %v1491_v62  ;;  %2779 = vmatpush3.msra.mxu1 %v1921_v20 }
 0x3bc   : > { %2735 = vmatpush3.msra.mxu0 %v1491_v62  ;;  %2780 = vmatprep.subr.mxu1 %v1920_v21 }
 0x3bd   : > { %2736 = vmatprep.subr.mxu0 %v1490_v1  ;;  %2781 = vmatpush3.msra.mxu1 %v1920_v21 }
 0x3be   : > { %2737 = vmatpush3.msra.mxu0 %v1490_v1  ;;  %2782 = vmatprep.subr.mxu1 %v1919_v22 }
 0x3bf   : > { %2738 = vmatprep.subr.mxu0 %v1489_v55  ;;  %2783 = vmatpush3.msra.mxu1 %v1919_v22 }
 0x3c0   : > { %2739 = vmatpush3.msra.mxu0 %v1489_v55  ;;  %2784 = vmatprep.subr.mxu1 %v1918_v23 }
 0x3c1   : > { %2741 = vmatmul.mubr.f32.vlgmr.msra.gmra.mxu0 %v1474_v2  ;;  %2785 = vmatpush3.msra.mxu1 %v1918_v23 }
 0x3c2   : > { %2743 = vmatprep.mubr.f32.mxu0 %v1475_v58  ;;  %2786 = vmatprep.subr.mxu1 %v1917_v24 }
 0x3c3   : > { %2787 = vmatpush3.msra.mxu1 %v1917_v24 }
 0x3c4   : > { %2788 = vmatprep.subr.mxu1 %v1916_v25 }
 0x3c5   : > { %2744 = vmatmul.mubr.f32.gmra.mxu0 %v1476_v5  ;;  %2789 = vmatpush3.msra.mxu1 %v1916_v25 }
 0x3c6   : > { %2746 = vmatprep.mubr.f32.mxu0 %v1477_v6  ;;  %2790 = vmatprep.subr.mxu1 %v1915_v26 }
 0x3c7   : > { %2791 = vmatpush3.msra.mxu1 %v1915_v26 }
 0x3c8   : > { %2792 = vmatprep.subr.mxu1 %v1914_v27 }
 0x3c9   : > { %2747 = vmatmul.mubr.f32.gmra.mxu0 %v1478_v7  ;;  %2793 = vmatpush3.msra.mxu1 %v1914_v27 }
 0x3ca   : > { %2749 = vmatprep.mubr.f32.mxu0 %v1479_v63  ;;  %2794 = vmatprep.subr.mxu1 %v1913_v28 }
 0x3cb   : > { %2795 = vmatpush3.msra.mxu1 %v1913_v28 }
 0x3cd   : > { %2750 = vmatmul.mubr.f32.gmra.mxu0 %v1480_v8 }
 0x3ce   : > { %2752 = vmatprep.mubr.f32.mxu0 %v1481_v9 }
 0x3d1   : > { %2753 = vmatmul.mubr.f32.gmra.mxu0 %v1482_v10 }
 0x3d2   : > { %2755 = vmatprep.mubr.f32.mxu0 %v1483_v0 }
 0x3d5   : > { %2756 = vmatmul.mubr.f32.gmra.mxu0 %v1484_v11 }
 0x3d6   : > { %2758 = vmatprep.mubr.f32.mxu0 %v1485_v3 }
 0x3d9   : > { %2759 = vmatmul.mubr.f32.gmra.mxu0 %v1486_v12 }
 0x3da   : > { %2761 = vmatprep.mubr.f32.mxu0 %v1487_v13 }
 0x3dd   : > { %2762 = vmatmul.mubr.f32.gmra.mxu0 %v1488_v14 }
 0x481   : > { %v2742_v30 = vpop.f32.mrf.mxu0 }
 0x482   : > { %v3494_v31 = vadd.f32 %v2742_v30, %v3491_v29 }
 0x483   : > { %v1578_v32 = vpop.f32.mrf.mxu0 }
 0x484   : > { %v1674_v34 = vand.u32 2147483647, %v3494_v31  ;;  %v3498_v35 = vadd.f32 %v3491_v29, %v1578_v32 }
 0x485   : > { %v2745_v36 = vpop.f32.mrf.mxu0 }
 0x486   : > { %v1690_v37 = vsub.f32 0.0, %v1674_v34  ;;  %v1673_v38 = vand.u32 2147483647, %v3498_v35  ;;  %v3502_v39 = vadd.f32 %v2745_v36, %v3491_v29 }
 0x487   : > { %v1588_v40 = vpop.f32.mrf.mxu0 }
 0x488   : > { %v1707_v41 = vmul.f32 1.442695, %v1690_v37  ;;  %v1689_v42 = vsub.f32 0.0, %v1673_v38  ;;  %v1676_v43 = vand.u32 2147483647, %v3502_v39  ;;  %v3506_v44 = vadd.f32 %v3491_v29, %v1588_v40 }
 0x489   : > { %v2748_v45 = vpop.f32.mrf.mxu0  ;;  %v1658_v37 = vmax.f32 %v3494_v31, 0.0 }
 0x48a   : > { %v1705_v46 = vmul.f32 1.442695, %v1689_v42  ;;  %v3509_v47 = vadd.f32 %v2748_v45, %v3491_v29  ;;  %2913 = vpow2.f32 %v1707_v41  ;;  %v1675_v48 = vand.u32 2147483647, %v3506_v44 }
 0x48b   : > { %v1598_v49 = vpop.f32.mrf.mxu0  ;;  %v1692_v50 = vsub.f32 0.0, %v1676_v43  ;;  %v1660_v42 = vmax.f32 %v3502_v39, 0.0  ;;  %v1659_v43 = vmax.f32 %v3506_v44, 0.0 }
 0x48c   : > { %2915 = vpow2.f32 %v1705_v46  ;;  %v1691_v51 = vsub.f32 0.0, %v1675_v48  ;;  %v1678_v52 = vand.u32 2147483647, %v3509_v47  ;;  %v3514_v53 = vadd.f32 %v3491_v29, %v1598_v49 }
 0x48d   : > { %v2751_v54 = vpop.f32.mrf.mxu0  ;;  %v1711_v1 = vmul.f32 1.442695, %v1692_v50  ;;  %v1657_v48 = vmax.f32 %v3498_v35, 0.0 }
 0x48e   : > { %v3517_v56 = vadd.f32 %v2751_v54, %v3491_v29  ;;  %v1709_v57 = vmul.f32 1.442695, %v1691_v51  ;;  %v1677_v59 = vand.u32 2147483647, %v3514_v53  ;;  %v1694_v55 = vsub.f32 0.0, %v1678_v52 }
 0x48f   : > { %v1608_v60 = vpop.f32.mrf.mxu0 }
 0x490   : > { %v1680_v61 = vand.u32 2147483647, %v3517_v56  ;;  %v3522_v62 = vadd.f32 %v3491_v29, %v1608_v60  ;;  %v1693_v2 = vsub.f32 0.0, %v1677_v59  ;;  %2917 = vpow2.f32 %v1709_v57 }
 0x491   : > { %v2754_v58 = vpop.f32.mrf.mxu0  ;;  %2919 = vpow2.f32 %v1711_v1  ;;  %v1715_v0 = vmul.f32 1.442695, %v1694_v55 }
 0x492   : > { %v1679_v5 = vand.u32 2147483647, %v3522_v62  ;;  %v1713_v6 = vmul.f32 1.442695, %v1693_v2  ;;  %v1696_v7 = vsub.f32 0.0, %v1680_v61  ;;  %v3526_v63 = vadd.f32 %v2754_v58, %v3491_v29 }
 0x493   : > { %v1618_v8 = vpop.f32.mrf.mxu0  ;;  %v1662_v61 = vmax.f32 %v3509_v47, 0.0  ;;  %v1661_v2 = vmax.f32 %v3514_v53, 0.0  ;;  %v1664_v58 = vmax.f32 %v3517_v56, 0.0 }
 0x494   : > { %v1695_v9 = vsub.f32 0.0, %v1679_v5  ;;  %v3529_v10 = vadd.f32 %v3491_v29, %v1618_v8  ;;  %v1682_v3 = vand.u32 2147483647, %v3526_v63  ;;  %2921 = vpow2.f32 %v1713_v6 }
 0x495   : > { %v2757_v11 = vpop.f32.mrf.mxu0  ;;  %v1719_v13 = vmul.f32 1.442695, %v1696_v7  ;;  %2923 = vpow2.f32 %v1715_v0  ;;  %v1663_v5 = vmax.f32 %v3522_v62, 0.0 }
 0x496   : > { %v1681_v12 = vand.u32 2147483647, %v3529_v10  ;;  %v3534_v14 = vadd.f32 %v2757_v11, %v3491_v29  ;;  %v1717_v15 = vmul.f32 1.442695, %v1695_v9  ;;  %v1698_v21 = vsub.f32 0.0, %v1682_v3 }
 0x497   : > { %v1628_v4 = vpop.f32.mrf.mxu0  ;;  %v3536_v33 = vpop.eup %2913  ;;  %2925 = vpow2.f32 %v1719_v13  ;;  %v1666_v13 = vmax.f32 %v3526_v63, 0.0 }
 0x498   : > { %v1697_v16 = vsub.f32 0.0, %v1681_v12  ;;  %v3539_v17 = vadd.f32 %v3491_v29, %v1628_v4  ;;  %v1684_v19 = vand.u32 2147483647, %v3534_v14  ;;  %2927 = vpow2.f32 %v1717_v15 }
 0x499   : > { %v3541_v18 = vpop.eup %2915  ;;  %v2760_v20 = vpop.f32.mrf.mxu0  ;;  %v1746_v36 = vadd.f32 1.0, %v3536_v33  ;;  %v1723_v38 = vmul.f32 1.442695, %v1698_v21  ;;  %v1749_v55 = vmul.f32 -0.5, %v3536_v33  ;;  %v1665_v4 = vmax.f32 %v3529_v10, 0.0 }
 0x49a   : > { %v1683_v22 = vand.u32 2147483647, %v3539_v17  ;;  %v3546_v23 = vadd.f32 %v2760_v20, %v3491_v29  ;;  %v1737_v25 = vadd.f32 1.0, %v3541_v18  ;;  %v1721_v26 = vmul.f32 1.442695, %v1697_v16 }
 0x49b   : > { %v1638_v24 = vpop.f32.mrf.mxu0  ;;  %v1700_v30 = vsub.f32 0.0, %v1684_v19  ;;  %v1740_v52 = vmul.f32 -0.5, %v3541_v18  ;;  %v1743_v11 = vand.u32 2147483647, %v3541_v18  ;;  %v1750_v15 = vadd.f32 1.0, %v1749_v55 }
 0x49c   : > { %v1699_v27 = vsub.f32 0.0, %v1683_v22  ;;  %v1686_v28 = vand.u32 2147483647, %v3546_v23  ;;  %v3551_v32 = vadd.f32 %v3491_v29, %v1638_v24  ;;  %2929 = vlog2.f32 %v1737_v25 }
 0x49d   : > { %v2763_v34 = vpop.f32.mrf.mxu0  ;;  %v3562_v49 = vpop.eup %2917  ;;  %2931 = vpow2.f32 %v1721_v26  ;;  %v1727_v54 = vmul.f32 1.442695, %v1700_v30  ;;  %v1741_v9 = vadd.f32 1.0, %v1740_v52  ;;  %v1667_v16 = vmax.f32 %v3539_v17, 0.0 }
 0x49e   : > { %v1702_v40 = vsub.f32 0.0, %v1686_v28  ;;  %v3556_v41 = vadd.f32 %v2763_v34, %v3491_v29  ;;  %v1685_v45 = vand.u32 2147483647, %v3551_v32  ;;  %v1725_v50 = vmul.f32 1.442695, %v1699_v27  ;;  %v3569_v60 = vpop.eup %2919 }
 0x49f   : > { %v1648_v46 = vpop.f32.mrf.mxu0  ;;  %2933 = vlog2.f32 %v1746_v36  ;;  %v1755_v6 = vadd.f32 1.0, %v3562_v49  ;;  %v1764_v3 = vadd.f32 1.0, %v3569_v60  ;;  %v1752_v19 = vand.u32 2147483647, %v3536_v33 }
 0x4a0   : > { %v1688_v51 = vand.u32 2147483647, %v3556_v41  ;;  %v1701_v57 = vsub.f32 0.0, %v1685_v45  ;;  %v3567_v59 = vadd.f32 %v3491_v29, %v1648_v46  ;;  %2935 = vpow2.f32 %v1723_v38 }
 0x4a1   : > { %v1731_v1 = vmul.f32 1.442695, %v1702_v40  ;;  %v3577_v7 = vpop.eup %2921  ;;  %2937 = vpow2.f32 %v1725_v50  ;;  %v1758_v25 = vmul.f32 -0.5, %v3562_v49  ;;  %v1742_v27 = vmul.f32 %v3541_v18, %v1741_v9 }
 0x4a2   : > { %v1704_v29 = vsub.f32 0.0, %v1688_v51  ;;  %v1687_v8 = vand.u32 2147483647, %v3567_v59  ;;  %2939 = vpow2.f32 %v1727_v54  ;;  %v1729_v0 = vmul.f32 1.442695, %v1701_v57  ;;  %v3582_v12 = vpop.eup %2923 }
 0x4a3   : > { %2941 = vpow2.f32 %v1731_v1  ;;  %v1773_v20 = vadd.f32 1.0, %v3577_v7  ;;  %vm3595_vm0 = vcmp.lt.f32.partialorder %v1743_v11, 0.0004427343  ;;  %v1782_v30 = vadd.f32 1.0, %v3582_v12 }
 0x4a4   : > { %2943 = vlog2.f32 %v1755_v6  ;;  %v3589_v21 = vpop.eup %2925  ;;  %v1735_v22 = vmul.f32 1.442695, %v1704_v29  ;;  %v1703_v24 = vsub.f32 0.0, %v1687_v8  ;;  %v1751_v36 = vmul.f32 %v3536_v33, %v1750_v15 }
 0x4a5   : > { %2945 = vlog2.f32 %v1764_v3  ;;  %v3592_v26 = vpop.eup %2927  ;;  %v1761_v38 = vand.u32 2147483647, %v3562_v49  ;;  %v1767_v40 = vmul.f32 -0.5, %v3569_v60  ;;  %vm3603_vm1 = vcmp.lt.f32.partialorder %v1752_v19, 0.0004427343 }
 0x4a6   : > { %2947 = vpow2.f32 %v1729_v0  ;;  %v1770_v18 = vand.u32 2147483647, %v3569_v60  ;;  %v1733_v50 = vmul.f32 1.442695, %v1703_v24  ;;  %v1759_v51 = vadd.f32 1.0, %v1758_v25 }
 0x4a7   : > { %2949 = vlog2.f32 %v1773_v20  ;;  %v1791_v52 = vadd.f32 1.0, %v3592_v26  ;;  %v1776_v57 = vmul.f32 -0.5, %v3577_v7  ;;  %v1785_v1 = vmul.f32 -0.5, %v3582_v12 }
 0x4a8   : > { %2951 = vlog2.f32 %v1782_v30  ;;  %v1800_v55 = vadd.f32 1.0, %v3589_v21  ;;  %vm3618_vm2 = vcmp.lt.f32.partialorder %v1761_v38, 0.0004427343  ;;  %v1768_v9 = vadd.f32 1.0, %v1767_v40 }
 0x4a9   : > { %v2930_v34 = vpop.eup %2929  ;;  %2953 = vpow2.f32 %v1735_v22  ;;  %vm3624_vm3 = vcmp.lt.f32.partialorder %v1770_v18, 0.0004427343  ;;  %v1779_v15 = vand.u32 2147483647, %v3577_v7  ;;  %v1794_v19 = vmul.f32 -0.5, %v3592_v26 }
 0x4aa   : > { %v1739_v45 = vmul.f32 0.6931472, %v2930_v34  ;;  %v3609_v54 = vpop.eup %2931  ;;  %2955 = vlog2.f32 %v1791_v52  ;;  %v1788_v20 = vand.u32 2147483647, %v3582_v12  ;;  %v1786_v28 = vadd.f32 1.0, %v1785_v1 }
 0x4ab   : > { %2957 = vlog2.f32 %v1800_v55  ;;  %v1809_v22 = vadd.f32 1.0, %v3609_v54  ;;  %v1797_v30 = vand.u32 2147483647, %v3592_v26  ;;  %vm3647_vm4 = vcmp.lt.f32.partialorder %v1779_v15, 0.0004427343 }
 0x4ac   : > { %v1745_v33 = vsel %vm3595_vm0, %v1742_v27, %v1739_v45  ;;  %v2934_v6 = vpop.eup %2933  ;;  %v1777_v27 = vadd.f32 1.0, %v1776_v57  ;;  %v1795_v18 = vadd.f32 1.0, %v1794_v19  ;;  %vm3651_vm5 = vcmp.lt.f32.partialorder %v1788_v20, 0.0004427343 }
 0x4ad   : > { %v1881_v29 = vadd.f32 %v1745_v33, %v1657_v48  ;;  %v3622_v0 = vpop.eup %2935  ;;  %v1748_v11 = vmul.f32 0.6931472, %v2934_v6  ;;  %v1760_v48 = vmul.f32 %v3562_v49, %v1759_v51  ;;  %v1803_v49 = vmul.f32 -0.5, %v3589_v21 }
 0x4ae   : > { %v3633_v24 = vpop.eup %2937  ;;  %2959 = vlog2.f32 %v1809_v22  ;;  %v1818_v40 = vadd.f32 1.0, %v3622_v0  ;;  %vm3658_vm6 = vcmp.lt.f32.partialorder %v1797_v30, 0.0004427343  ;;  %v1824_v31 = vand.u32 2147483647, %v3622_v0 }
 0x4af   : > { %v2349_v35 = vadd.f32 -0.6931472, %v1881_v29  ;;  %v1754_v25 = vsel %vm3603_vm1, %v1751_v36, %v1748_v11  ;;  %v3638_v34 = vpop.eup %2939  ;;  %2961 = vpow2.f32 %v1733_v50  ;;  %v1769_v36 = vmul.f32 %v3569_v60, %v1768_v9 }
 0x4b0   : > { %v1882_v38 = vadd.f32 %v1754_v25, %v1658_v37  ;;  %v3644_v45 = vpop.eup %2941  ;;  %2963 = vlog2.f32 %v1818_v40  ;;  %v1827_v37 = vadd.f32 1.0, %v3633_v24  ;;  %v1778_v50 = vmul.f32 %v3577_v7, %v1777_v27 }
 0x4b1   : > { %2796 = vmatprep.mubr.f32.mxu1 %v2349_v35  ;;  %v2944_v51 = vpop.eup %2943  ;;  %v1787_v60 = vmul.f32 %v3582_v12, %v1786_v28  ;;  %v1804_v29 = vadd.f32 1.0, %v1803_v49  ;;  %v1806_v9 = vand.u32 2147483647, %v3589_v21  ;;  %v1796_v7 = vmul.f32 %v3592_v26, %v1795_v18 }
 0x4b2   : > { %v2350_v52 = vadd.f32 -0.6931472, %v1882_v38  ;;  %v2946_v33 = vpop.eup %2945  ;;  %v1757_v57 = vmul.f32 0.6931472, %v2944_v51  ;;  %2965 = vlog2.f32 %v1827_v37  ;;  %v1812_v12 = vmul.f32 -0.5, %v3609_v54 }
 0x4b3   : > { %v3662_v55 = vpop.eup %2947  ;;  %v1766_v6 = vmul.f32 0.6931472, %v2946_v33  ;;  %v1836_v19 = vadd.f32 1.0, %v3638_v34  ;;  %v1815_v27 = vand.u32 2147483647, %v3609_v54  ;;  %v1830_v51 = vmul.f32 -0.5, %v3633_v24 }
 0x4b4   : > { %2797 = vmatmul.mubr.f32.vlgmr.msra.gmra.mxu1 %v2350_v52  ;;  %v2950_v11 = vpop.eup %2949  ;;  %v1763_v15 = vsel %vm3618_vm2, %v1760_v48, %v1757_v57  ;;  %v1821_v48 = vmul.f32 -0.5, %v3622_v0  ;;  %vm3683_vm7 = vcmp.lt.f32.partialorder %v1806_v9, 0.0004427343  ;;  %v1845_v40 = vadd.f32 1.0, %v3662_v55 }
 0x4b5   : > { %v2952_v35 = vpop.eup %2951  ;;  %v1883_v20 = vadd.f32 %v1763_v15, %v1659_v43  ;;  %v1772_v22 = vsel %vm3624_vm3, %v1769_v36, %v1766_v6  ;;  %v1775_v25 = vmul.f32 0.6931472, %v2950_v11  ;;  %2967 = vlog2.f32 %v1836_v19 }
 0x4b6   : > { %v3675_v28 = vpop.eup %2953  ;;  %v1884_v8 = vadd.f32 %v1772_v22, %v1660_v42  ;;  %v1784_v26 = vmul.f32 0.6931472, %v2952_v35  ;;  %v1805_v43 = vmul.f32 %v3589_v21, %v1804_v29  ;;  %v1813_v18 = vadd.f32 1.0, %v1812_v12 }
 0x4b7   : > { %v2351_v30 = vadd.f32 -0.6931472, %v1883_v20  ;;  %v1781_v44 = vsel %vm3647_vm4, %v1778_v50, %v1775_v25  ;;  %v2956_v38 = vpop.eup %2955  ;;  %v1822_v33 = vadd.f32 1.0, %v1821_v48  ;;  %2969 = vlog2.f32 %v1845_v40 }
 0x4b8   : > { %v2352_v49 = vadd.f32 -0.6931472, %v1884_v8  ;;  %v1885_v39 = vadd.f32 %v1781_v44, %v1661_v2  ;;  %v1790_v42 = vsel %vm3651_vm5, %v1787_v60, %v1784_v26  ;;  %v2958_v36 = vpop.eup %2957  ;;  %v1793_v21 = vmul.f32 0.6931472, %v2956_v38 }
 0x4b9   : > { %2799 = vmatprep.mubr.f32.mxu1 %v2351_v30  ;;  %v1886_v46 = vadd.f32 %v1790_v42, %v1662_v61  ;;  %v1802_v37 = vmul.f32 0.6931472, %v2958_v36  ;;  %vm3697_vm8 = vcmp.lt.f32.partialorder %v1815_v27, 0.0004427343  ;;  %v1839_v47 = vmul.f32 -0.5, %v3638_v34 }
 0x4ba   : > { %2800 = vmatmul.mubr.f32.gmra.mxu1 %v2352_v49  ;;  %v2353_v52 = vadd.f32 -0.6931472, %v1885_v39  ;;  %v1799_v53 = vsel %vm3658_vm6, %v1796_v7, %v1793_v21  ;;  %v1854_v1 = vadd.f32 1.0, %v3644_v45  ;;  %v1814_v11 = vmul.f32 %v3609_v54, %v1813_v18 }
 0x4bb   : > { %v2960_v61 = vpop.eup %2959  ;;  %v2354_v57 = vadd.f32 -0.6931472, %v1886_v46  ;;  %v1887_v50 = vadd.f32 %v1799_v53, %v1663_v5  ;;  %v1808_v60 = vsel %vm3683_vm7, %v1805_v43, %v1802_v37  ;;  %v1831_v15 = vadd.f32 1.0, %v1830_v51 }
 0x4bc   : > { %2802 = vmatprep.mubr.f32.mxu1 %v2353_v52  ;;  %v3708_v6 = vpop.eup %2961  ;;  %v1888_v29 = vadd.f32 %v1808_v60, %v1664_v58  ;;  %v1811_v9 = vmul.f32 0.6931472, %v2960_v61  ;;  %v1823_v62 = vmul.f32 %v3622_v0, %v1822_v33  ;;  %v1833_v5 = vand.u32 2147483647, %v3633_v24 }
 0x4bd   : > { %v2964_v7 = vpop.eup %2963  ;;  %v2355_v12 = vadd.f32 -0.6931472, %v1887_v50  ;;  %2971 = vlog2.f32 %v1854_v1  ;;  %v1840_v20 = vadd.f32 1.0, %v1839_v47  ;;  %v1848_v56 = vmul.f32 -0.5, %v3662_v55 }
 0x4be   : > { %2803 = vmatmul.mubr.f32.gmra.mxu1 %v2354_v57  ;;  %v1817_v19 = vsel %vm3697_vm8, %v1814_v11, %v1811_v9  ;;  %v1820_v35 = vmul.f32 0.6931472, %v2964_v7  ;;  %v2356_v22 = vadd.f32 -0.6931472, %v1888_v29  ;;  %vm1825_vm9 = vcmp.lt.f32.partialorder %v1824_v31, 0.0004427343 }
 0x4bf   : > { %v2966_v58 = vpop.eup %2965  ;;  %2805 = vmatprep.mubr.f32.mxu1 %v2355_v12  ;;  %v1889_v54 = vadd.f32 %v1817_v19, %v1665_v4  ;;  %v1863_v25 = vadd.f32 1.0, %v3708_v6  ;;  %v1832_v8 = vmul.f32 %v3633_v24, %v1831_v15  ;;  %v1842_v26 = vand.u32 2147483647, %v3638_v34 }
 0x4c0   : > { %v1826_v0 = vsel %vm1825_vm9, %v1823_v62, %v1820_v35  ;;  %v1829_v27 = vmul.f32 0.6931472, %v2966_v58  ;;  %vm1834_vm10 = vcmp.lt.f32.partialorder %v1833_v5, 0.0004427343  ;;  %v1841_v10 = vmul.f32 %v3638_v34, %v1840_v20 }
 0x4c1   : > { %v2357_v48 = vadd.f32 -0.6931472, %v1889_v54  ;;  %v1890_v30 = vadd.f32 %v1826_v0, %v1666_v13  ;;  %2973 = vlog2.f32 %v1863_v25  ;;  %v1849_v4 = vadd.f32 1.0, %v1848_v56  ;;  %v2081_v54 = vld [vmem:[%s3890_s11] sm:$0xff] }
 0x4c2   : > { %2806 = vmatmul.mubr.f32.gmra.mxu1 %v2356_v22  ;;  %v2968_v44 = vpop.eup %2967  ;;  %v1835_v43 = vsel %vm1834_vm10, %v1832_v8, %v1829_v27  ;;  %v1872_v3 = vadd.f32 1.0, %v3675_v28  ;;  %v1857_v39 = vmul.f32 -0.5, %v3644_v45  ;;  %v1668_v63 = vmax.f32 %v3534_v14, 0.0 }
 0x4c3   : > { %2808 = vmatprep.mubr.f32.mxu1 %v2357_v48  ;;  %v2358_v38 = vadd.f32 -0.6931472, %v1890_v30  ;;  %v1891_v24 = vadd.f32 %v1835_v43, %v1667_v16  ;;  %v1838_v49 = vmul.f32 0.6931472, %v2968_v44  ;;  %vm1843_vm11 = vcmp.lt.f32.partialorder %v1842_v26, 0.0004427343 }
 0x4c4   : > { %v1851_v13 = vand.u32 2147483647, %v3662_v55  ;;  %2975 = vlog2.f32 %v1872_v3  ;;  %v2970_v40 = vpop.eup %2969  ;;  %v1669_v36 = vmax.f32 %v3551_v32, 0.0  ;;  %v1850_v17 = vmul.f32 %v3662_v55, %v1849_v4  ;;  %v2084_v26 = vld [vmem:[%s3890_s11 + $0x18] sm:$0xff]  ;;  %v2083_v44 = vld [vmem:[%s3890_s11 + $0x10] sm:$0xff]  ;;  %v2086_v3 = vld [vmem:[%s3890_s11 + $0x28] sm:$0xff] }
 0x4c5   : > { %v2359_v42 = vadd.f32 -0.6931472, %v1891_v24  ;;  %v1844_v34 = vsel %vm1843_vm11, %v1841_v10, %v1838_v49  ;;  %v1847_v21 = vmul.f32 0.6931472, %v2970_v40  ;;  %v1858_v16 = vadd.f32 1.0, %v1857_v39  ;;  %v2085_v39 = vld [vmem:[%s3890_s11 + $0x20] sm:$0xff] }
 0x4c6   : > { %2809 = vmatmul.mubr.f32.gmra.mxu1 %v2358_v38  ;;  %v1892_v46 = vadd.f32 %v1844_v34, %v1668_v63  ;;  %v1866_v18 = vmul.f32 -0.5, %v3708_v6  ;;  %vm1852_vm12 = vcmp.lt.f32.partialorder %v1851_v13, 0.0004427343  ;;  %v1860_v14 = vand.u32 2147483647, %v3644_v45  ;;  %v2088_v34 = vld [vmem:[%s3890_s11 + $0x38] sm:$0xff] }
 0x4c7   : > { %2811 = vmatprep.mubr.f32.mxu1 %v2359_v42  ;;  %v1853_v52 = vsel %vm1852_vm12, %v1850_v17, %v1847_v21  ;;  %v1875_v53 = vmul.f32 -0.5, %v3675_v28  ;;  %v1670_v32 = vmax.f32 %v3546_v23, 0.0  ;;  %v1859_v31 = vmul.f32 %v3644_v45, %v1858_v16  ;;  %v2087_v21 = vld [vmem:[%s3890_s11 + $0x30] sm:$0xff] }
 0x4c8   : > { %v2360_v51 = vadd.f32 -0.6931472, %v1892_v46  ;;  %v1893_v33 = vadd.f32 %v1853_v52, %v1669_v36  ;;  %v1867_v47 = vadd.f32 1.0, %v1866_v18  ;;  %vm1861_vm13 = vcmp.lt.f32.partialorder %v1860_v14, 0.0004427343 }
 0x4c9   : > { %v1869_v61 = vand.u32 2147483647, %v3708_v6  ;;  %v1876_v1 = vadd.f32 1.0, %v1875_v53  ;;  %v1878_v11 = vand.u32 2147483647, %v3675_v28  ;;  %v1671_v23 = vmax.f32 %v3567_v59, 0.0 }
 0x4ca   : > { %v2972_v37 = vpop.eup %2971  ;;  %2812 = vmatmul.mubr.f32.gmra.mxu1 %v2360_v51  ;;  %v2361_v55 = vadd.f32 -0.6931472, %v1893_v33  ;;  %v1868_v9 = vmul.f32 %v3708_v6, %v1867_v47  ;;  %v1672_v19 = vmax.f32 %v3556_v41, 0.0  ;;  %v3750_v59 = vld [vmem:[%s3937_s30] ss:$0 sm:$0xff]  ;;  %v2090_v51 = vld [vmem:[%s3890_s11 + $0x48] sm:$0xff] }
 0x4cb   : > { %v1856_v2 = vmul.f32 0.6931472, %v2972_v37  ;;  %vm1870_vm14 = vcmp.lt.f32.partialorder %v1869_v61, 0.0004427343  ;;  %v1877_v5 = vmul.f32 %v3675_v28, %v1876_v1  ;;  %vm1879_vm15 = vcmp.lt.f32.partialorder %v1878_v11, 0.0004427343 }
 0x4cc   : > { %2814 = vmatprep.mubr.f32.mxu1 %v2361_v55  ;;  %v2082_v28 = vld [vmem:[%s3890_s11 + $0x8] sm:$0xff]  ;;  %v2089_v33 = vld [vmem:[%s3890_s11 + $0x40] sm:$0xff]  ;;  %v2092_v47 = vld [vmem:[%s3890_s11 + $0x58] sm:$0xff] }
 0x4cd   : > { %v1862_v57 = vsel %vm1861_vm13, %v1859_v31, %v1856_v2 }
 0x4ce   : > { %v2974_v50 = vpop.eup %2973  ;;  %v1894_v60 = vadd.f32 %v1862_v57, %v1670_v32  ;;  %v2091_v57 = vld [vmem:[%s3890_s11 + $0x50] sm:$0xff] }
 0x4cf   : > { %v1865_v29 = vmul.f32 0.6931472, %v2974_v50 }
 0x4d0   : > { %v2362_v15 = vadd.f32 -0.6931472, %v1894_v60 }
 0x4d1   : > { %v2976_v45 = vpop.eup %2975  ;;  %v1871_v7 = vsel %vm1870_vm14, %v1868_v9, %v1865_v29  ;;  %v2094_v9 = vld [vmem:[%s3890_s11 + $0x68] sm:$0xff] }
 0x4d2   : > { %2815 = vmatmul.mubr.f32.gmra.mxu1 %v2362_v15  ;;  %v1895_v12 = vadd.f32 %v1871_v7, %v1671_v23  ;;  %v1874_v62 = vmul.f32 0.6931472, %v2976_v45  ;;  %v2093_v15 = vld [vmem:[%s3890_s11 + $0x60] sm:$0xff] }
 0x4d4   : > { %v2363_v35 = vadd.f32 -0.6931472, %v1895_v12  ;;  %v1880_v20 = vsel %vm1879_vm15, %v1877_v5, %v1874_v62  ;;  %v2096_v5 = vld [vmem:[%s3890_s11 + $0x78] sm:$0xff] }
 0x4d5   : > { %v1896_v6 = vadd.f32 %v1880_v20, %v1672_v19  ;;  %v2095_v20 = vld [vmem:[%s3890_s11 + $0x70] sm:$0xff] }
 0x4d6   : > { %2817 = vmatprep.mubr.f32.mxu1 %v2363_v35 }
 0x4d7   : > { %v2364_v56 = vadd.f32 -0.6931472, %v1896_v6 }
 0x4d9   : > { %2818 = vmatmul.mubr.f32.gmra.mxu1 %v2364_v56 }
 0x574   : > { %v2798_v58 = vpop.f32.mrf.mxu1 }
 0x575   : > { %v2008_v41 = vadd.f32 %v2798_v58, %v3750_v59 }
 0x576   : > { %v2002_v22 = vpop.f32.mrf.mxu1 }
 0x577   : > { %v2098_v25 = vadd.f32 %v2082_v28, %v2008_v41  ;;  %v2003_v0 = vadd.f32 %v3750_v59, %v2002_v22 }
 0x579   : > { %2114 = vst [vmem:[%s3890_s11 + $0x8] sm:$0xff] %v2098_v25  ;;  %v2097_v27 = vadd.f32 %v2081_v54, %v2003_v0 }
 0x57a   : > { %v2801_v8 = vpop.f32.mrf.mxu1 }
 0x57b   : > { %2113 = vst [vmem:[%s3890_s11] sm:$0xff] %v2097_v27  ;;  %v2018_v48 = vadd.f32 %v2801_v8, %v3750_v59 }
 0x57c   : > { %v2012_v30 = vpop.f32.mrf.mxu1 }
 0x57d   : > { %v2100_v43 = vadd.f32 %v2084_v26, %v2018_v48  ;;  %v2013_v10 = vadd.f32 %v3750_v59, %v2012_v30 }
 0x57e   : > { %v2804_v4 = vpop.f32.mrf.mxu1 }
 0x57f   : > { %2116 = vst [vmem:[%s3890_s11 + $0x18] sm:$0xff] %v2100_v43  ;;  %v2099_v38 = vadd.f32 %v2083_v44, %v2013_v10  ;;  %v2028_v24 = vadd.f32 %v2804_v4, %v3750_v59 }
 0x580   : > { %v2022_v49 = vpop.f32.mrf.mxu1 }
 0x581   : > { %2115 = vst [vmem:[%s3890_s11 + $0x10] sm:$0xff] %v2099_v38  ;;  %v2102_v63 = vadd.f32 %v2086_v3, %v2028_v24  ;;  %v2023_v13 = vadd.f32 %v3750_v59, %v2022_v49 }
 0x582   : > { %v2807_v42 = vpop.f32.mrf.mxu1 }
 0x583   : > { %2118 = vst [vmem:[%s3890_s11 + $0x28] sm:$0xff] %v2102_v63  ;;  %v2101_v40 = vadd.f32 %v2085_v39, %v2023_v13  ;;  %v2038_v36 = vadd.f32 %v2807_v42, %v3750_v59 }
 0x584   : > { %v2032_v46 = vpop.f32.mrf.mxu1 }
 0x585   : > { %2117 = vst [vmem:[%s3890_s11 + $0x20] sm:$0xff] %v2101_v40  ;;  %v2104_v17 = vadd.f32 %v2088_v34, %v2038_v36  ;;  %v2033_v16 = vadd.f32 %v3750_v59, %v2032_v46 }
 0x586   : > { %v2810_v18 = vpop.f32.mrf.mxu1 }
 0x587   : > { %2120 = vst [vmem:[%s3890_s11 + $0x38] sm:$0xff] %v2104_v17  ;;  %v2103_v14 = vadd.f32 %v2087_v21, %v2033_v16  ;;  %v2048_v52 = vadd.f32 %v2810_v18, %v3750_v59 }
 0x588   : > { %v2042_v37 = vpop.f32.mrf.mxu1 }
 0x589   : > { %2119 = vst [vmem:[%s3890_s11 + $0x30] sm:$0xff] %v2103_v14  ;;  %v2106_v53 = vadd.f32 %v2090_v51, %v2048_v52  ;;  %v2043_v32 = vadd.f32 %v3750_v59, %v2042_v37 }
 0x58a   : > { %v2813_v31 = vpop.f32.mrf.mxu1 }
 0x58b   : > { %2122 = vst [vmem:[%s3890_s11 + $0x48] sm:$0xff] %v2106_v53  ;;  %v2105_v2 = vadd.f32 %v2089_v33, %v2043_v32  ;;  %v2058_v55 = vadd.f32 %v2813_v31, %v3750_v59 }
 0x58c   : > { %v2052_v61 = vpop.f32.mrf.mxu1 }
 0x58d   : > { %2121 = vst [vmem:[%s3890_s11 + $0x40] sm:$0xff] %v2105_v2  ;;  %v2108_v50 = vadd.f32 %v2092_v47, %v2058_v55  ;;  %v2053_v60 = vadd.f32 %v3750_v59, %v2052_v61 }
 0x58f   : > { %2124 = vst [vmem:[%s3890_s11 + $0x58] sm:$0xff] %v2108_v50  ;;  %v2107_v1 = vadd.f32 %v2091_v57, %v2053_v60 }
 0x591   : > { %2123 = vst [vmem:[%s3890_s11 + $0x50] sm:$0xff] %v2107_v1 }
 0x592   : > { %v2816_v29 = vpop.f32.mrf.mxu1 }
 0x593   : > { %v2068_v11 = vadd.f32 %v2816_v29, %v3750_v59 }
 0x594   : > { %v2062_v23 = vpop.f32.mrf.mxu1 }
 0x595   : > { %v2110_v45 = vadd.f32 %v2094_v9, %v2068_v11  ;;  %v2063_v7 = vadd.f32 %v3750_v59, %v2062_v23 }
 0x597   : > { %2126 = vst [vmem:[%s3890_s11 + $0x68] sm:$0xff] %v2110_v45  ;;  %v2109_v12 = vadd.f32 %v2093_v15, %v2063_v7 }
 0x599   : > { %2125 = vst [vmem:[%s3890_s11 + $0x60] sm:$0xff] %v2109_v12  ;;  %v2819_v62 = vpop.f32.mrf.mxu1 }
 0x59a   : > { %v2078_v19 = vadd.f32 %v2819_v62, %v3750_v59 }
 0x59b   : > { %v2072_v35 = vpop.f32.mrf.mxu1 }
 0x59c   : > { %v2112_v6 = vadd.f32 %v2096_v5, %v2078_v19  ;;  %v2073_v56 = vadd.f32 %v3750_v59, %v2072_v35 }
 0x59e   : > { %2128 = vst [vmem:[%s3890_s11 + $0x78] sm:$0xff] %v2112_v6  ;;  %v2111_v58 = vadd.f32 %v2095_v20, %v2073_v56 }
 0x5a0   : > { %2127 = vst [vmem:[%s3890_s11 + $0x70] sm:$0xff] %v2111_v58 }
 0x5a1 PF: > { %s21_s21 = sadd.s32 1, %s3015_s21   ;;  %s3938_s17 = sld [smem:[#allocation4_spill]] }
 0x5a2   : > { %p18_p13 = scmp.ge.s32.totalorder %s21_s21, 6   ;;  %s3939_s18 = sld [smem:[#allocation5_spill]] }
 0x5a3   : > { %s3940_s19 = sld [smem:[#allocation6_spill]] }
 0x5a4   : > { %s3941_s20 = sld [smem:[#allocation7_spill]]  ;;  %20 = sbr.rel (!%p18_p13) target bundleno = 5 (0x5), region = 129 }

</bundles_post_ra>
